<compile_context>
chip_gen: v6e
topology: v6e:2x2x1
jax: 0.10.0
libtpu: 0.0.40
codegen_flags: <defaults>
</compile_context>

<pallas_src>
import jax
import jax.numpy as jnp
from jax.experimental import pallas as pl
from jax.experimental.pallas import tpu as pltpu

NUM_INPUT_FEATURES = 4
NUM_FILTERS = (32, 128)
_NEG = -1e30          # folded into b1/b2 at synthetic (T-padding) rows


def _round_up(x, m):
    return ((x + m - 1) // m) * m


def _vfe_kernel(f_ref, nv_ref,
                w1f_ref, w1m_ref, b1_ref,
                w2a_ref, w2b_ref, b2_ref,
                w3a_ref, w3b_ref, b3_ref,
                o_ref):
    f = f_ref[...]                                   # [B, T, C] f32
    bn, t, c_in = f.shape
    nv = nv_ref[...]                                 # [B, 1] f32 (#valid points)
    inv_nv = 1.0 / jnp.maximum(nv, 1.0)              # NaN-safe for padded voxels

    def dot(x2d, w_ref):
        # f32 operands end-to-end: MXU has plenty of slack at these K/N, and
        # this removes the per-iteration VPU casts + keeps f32 accuracy.
        return jnp.dot(x2d, w_ref[...], preferred_element_type=jnp.float32)

    # dynamic padding indicator: mask[b, p, 0] = (num_voxels[b] > p).
    # Synthetic rows from host-side T padding satisfy p >= T_orig >= nv, so
    # they are masked here automatically; their exclusion from the per-layer
    # maxes is handled by the -1e30 entries folded into b1/b2 on the host.
    t_idx = jax.lax.broadcasted_iota(jnp.int32, (bn, t), 1).astype(jnp.float32)
    mask = (nv > t_idx).astype(jnp.float32)[:, :, None]          # [B, T, 1]

    # --- layer 1: concat([f, xyz - mean]) @ w1 + b1, concat folded on host ---
    # feat @ w1 == f @ w1f - broadcast_T(mean @ w1m)
    mean = jnp.sum(f[:, :, :3], axis=1) * inv_nv                 # [B, 3]
    z1 = dot(f.reshape(bn * t, c_in), w1f_ref).reshape(bn, t, -1)
    z1 = z1 - dot(mean, w1m_ref)[:, None, :] + b1_ref[...]       # b1: [T, 16]
    pw1 = jnp.maximum(z1, 0.0)                                   # [B, T, 16]
    agg1 = jnp.max(pw1, axis=1)                                  # [B, 16]

    # --- layer 2: (concat([pw1, repeat(agg1)]) * mask) @ w2 + b2, split halves
    z2 = dot(pw1.reshape(bn * t, -1), w2a_ref).reshape(bn, t, -1)
    z2 = mask * (z2 + dot(agg1, w2b_ref)[:, None, :]) + b2_ref[...]
    pw2 = jnp.maximum(z2, 0.0)                                   # [B, T, 64]
    agg2 = jnp.max(pw2, axis=1)                                  # [B, 64]

    # --- layer 3: (concat([pw2, repeat(agg2)]) * mask) @ w3 + b3, relu, mask --
    z3 = dot(pw2.reshape(bn * t, -1), w3a_ref).reshape(bn, t, -1)
    z3 = mask * (z3 + dot(agg2, w3b_ref)[:, None, :]) + b3_ref[...]
    x3 = jnp.maximum(z3, 0.0) * mask                             # [B, T, 128]
    o_ref[...] = jnp.max(x3, axis=1)                             # [B, 128]


def _pick_block_n(n, t_pad, vmem_budget_bytes):
    """Size the voxel block from the lane-padded VMEM footprint.

    Every f32 intermediate (and the C=4 input tile) has its last dim padded to
    128 lanes, so the live cost per voxel is ~ (2 input pipeline buffers +
    ~4 live intermediates) rows of [T, 128] f32, plus the output buffers.
    """
    lane_row = 128 * 4                       # one lane-padded f32 row
    per_voxel = 2 * t_pad * lane_row         # double-buffered input tile
    per_voxel += 4 * t_pad * lane_row        # live intermediates (z/pw1, pw2, x3, mask/f)
    per_voxel += 2 * lane_row                # double-buffered output row
    bn = int(vmem_budget_bytes) // per_voxel
    bn = max(8, min(512, (bn // 8) * 8))
    bn = min(bn, _round_up(n, 8))
    if n > 8:                                # grid >= 2: feeds both v7x TCs and
        bn = min(bn, _round_up((n + 1) // 2, 8))   # overlaps DMA with compute
    return max(8, bn)


def voxel_feature_extractor(features, num_voxels, coors, params, *,
                            block_n=None,
                            vmem_budget_bytes=16 * 1024 * 1024,
                            vmem_limit_bytes=32 * 1024 * 1024):
    """features: [N, T, 4] f32 (padded point rows MUST be zero, as produced by
    the voxel generator); num_voxels: [N] int; coors unused (as in torch)."""
    del coors  # not used by the PyTorch forward pass
    n, t, c_in = features.shape
    u1, u2 = NUM_FILTERS[0] // 2, NUM_FILTERS[1] // 2
    out_c = NUM_FILTERS[1]

    # --- pad T to a sublane multiple so in-kernel (B,T,c)<->(B*T,c) reshapes
    # are free retiles.
    t_pad = _round_up(t, 8)
    if t_pad != t:
        features = jnp.pad(features, ((0, 0), (0, t_pad - t), (0, 0)))

    # --- pick the block size from the lane-padded footprint; pad N to match.
    if block_n is None:
        block_n = _pick_block_n(n, t_pad, vmem_budget_bytes)
    block_n = max(8, _round_up(block_n, 8))
    n_pad = _round_up(n, block_n)
    if n_pad != n:
        features = jnp.pad(features, ((0, n_pad - n), (0, 0), (0, 0)))
        num_voxels = jnp.pad(num_voxels, (0, n_pad - n))
    nv = num_voxels.astype(jnp.float32).reshape(n_pad, 1)

    # --- fold/split weights on the host so the kernel never materializes a
    # concat or a repeat(agg).  Everything stays f32 (weights are tiny; the
    # MXU is not the bottleneck here).
    w1, w2, w3 = params["w1"], params["w2"], params["w3"]
    w1f = w1[:c_in].at[:3].add(w1[c_in:])    # f @ w1f == f@w1[:C] + xyz@w1[C:]
    w1m = w1[c_in:]                          # mean term (per-voxel matmul)
    w2a, w2b = w2[:u1], w2[u1:]
    w3a, w3b = w3[:u2], w3[u2:]

    # Per-row bias tables: synthetic rows (p >= original T) get a large
    # negative bias so relu zeroes them and they never contribute to the
    # per-layer maxes; real padded rows (nv <= p < T) keep the reference's
    # relu(bias) contribution.  Zero extra in-kernel ops.
    row_ok = (jnp.arange(t_pad) < t)[:, None]
    b1 = jnp.where(row_ok, jnp.broadcast_to(params["b1"], (t_pad, u1)), _NEG)
    b2 = jnp.where(row_ok, jnp.broadcast_to(params["b2"], (t_pad, u2)), _NEG)
    b3 = params["b3"].reshape(1, out_c)
    weights = (w1f, w1m, b1, w2a, w2b, b2, w3a, w3b, b3)

    def full(a):
        nd = a.ndim
        return pl.BlockSpec(a.shape, lambda i, _nd=nd: (0,) * _nd)

    grid_spec = pltpu.PrefetchScalarGridSpec(
        num_scalar_prefetch=0,
        grid=(n_pad // block_n,),
        in_specs=[
            # Full trailing (T, C) extents -> one contiguous HBM region/block.
            pl.BlockSpec((block_n, t_pad, c_in), lambda i: (i, 0, 0)),
            pl.BlockSpec((block_n, 1), lambda i: (i, 0)),
        ] + [full(a) for a in weights],
        out_specs=pl.BlockSpec((block_n, out_c), lambda i: (i, 0)),   # lane-dense
    )
    out = pl.pallas_call(
        _vfe_kernel,
        out_shape=jax.ShapeDtypeStruct((n_pad, out_c), jnp.float32),
        grid_spec=grid_spec,
        compiler_params=pltpu.CompilerParams(
            dimension_semantics=("parallel",),
            vmem_limit_bytes=vmem_limit_bytes),
    )(features, nv, *weights)
    return out[:n]


def init_params(key):
    c_in = NUM_INPUT_FEATURES + 3          # 7 (relative xyz appended)
    u1 = NUM_FILTERS[0] // 2               # 16
    u2 = NUM_FILTERS[1] // 2               # 64
    c2 = NUM_FILTERS[0]                    # 32
    c3 = NUM_FILTERS[1]                    # 128
    ks = jax.random.split(key, 6)

    def w(k, i, o):
        return jax.random.normal(k, (i, o), jnp.float32) / jnp.sqrt(float(i))

    def b(k, o):
        return jax.random.normal(k, (1, o), jnp.float32) * 0.01

    return dict(w1=w(ks[0], c_in, u1), b1=b(ks[1], u1),
                w2=w(ks[2], c2, u2), b2=b(ks[3], u2),
                w3=w(ks[4], c3, c3), b3=b(ks[5], c3))


def reference(features, num_voxels, params):
    """Plain-JAX f32 mirror of the PyTorch forward (Empty-norm config)."""
    hp = jax.lax.Precision.HIGHEST
    nv = num_voxels.astype(features.dtype)[:, None, None]
    xyz = features[:, :, :3]
    mean = xyz.sum(axis=1, keepdims=True) / nv
    feat = jnp.concatenate([features, xyz - mean], axis=-1)
    t = features.shape[1]
    mask = (num_voxels[:, None] > jnp.arange(t)[None, :]).astype(
        features.dtype)[:, :, None]

    def vfe(x, w, b):
        pw = jax.nn.relu(jnp.einsum("ntc,cu->ntu", x, w, precision=hp) + b)
        agg = pw.max(axis=1, keepdims=True)
        return jnp.concatenate([pw, jnp.broadcast_to(agg, pw.shape)], axis=-1)

    x = vfe(feat, params["w1"], params["b1"]) * mask
    x = vfe(x, params["w2"], params["b2"]) * mask
    x = jax.nn.relu(jnp.einsum("ntc,cu->ntu", x, params["w3"], precision=hp)
                    + params["b3"]) * mask
    return x.max(axis=1)


if __name__ == "__main__":
    key = jax.random.PRNGKey(0)
    params = init_params(jax.random.fold_in(key, 0))

    # Small shapes that exercise the T-pad path (T % 8 != 0), the N-pad path,
    # a multi-block grid, a fully-occupied voxel and a single-point voxel.
    for case, (N, T) in enumerate([(19, 11), (16, 8)]):
        kf, kn = jax.random.split(jax.random.fold_in(key, case + 1))
        num_voxels = jax.random.randint(kn, (N,), 1, T + 1)
        num_voxels = num_voxels.at[0].set(T).at[1].set(1)
        features = jax.random.normal(kf, (N, T, NUM_INPUT_FEATURES), jnp.float32)
        valid = (num_voxels[:, None] > jnp.arange(T)[None, :]).astype(jnp.float32)
        features = features * valid[:, :, None]   # precondition: padded rows zero
        coors = jnp.zeros((N, 4), jnp.int32)       # in the signature, unused

        out = voxel_feature_extractor(features, num_voxels, coors, params)
        out = jax.block_until_ready(out)
        ref = reference(features, num_voxels, params)
        assert out.shape == (N, NUM_FILTERS[1]), out.shape
        err = float(jnp.abs(out - ref).max())
        # f32 end-to-end -> tight tolerance (previously 5e-2 with bf16 MXU ops).
        assert jnp.allclose(out, ref, atol=2e-3, rtol=2e-3), err
    print("KERNEL_OK")
</pallas_src>

<mosaic_0001>
module attributes {stable_mosaic.version = 11 : i64} {
  func.func @_vfe_kernel(%arg0: i32, %arg1: memref<16x16x4xf32, #tpu.memory_space<vmem>>, %arg2: memref<16x1xf32, #tpu.memory_space<vmem>>, %arg3: memref<4x16xf32, #tpu.memory_space<vmem>>, %arg4: memref<3x16xf32, #tpu.memory_space<vmem>>, %arg5: memref<16x16xf32, #tpu.memory_space<vmem>>, %arg6: memref<16x64xf32, #tpu.memory_space<vmem>>, %arg7: memref<16x64xf32, #tpu.memory_space<vmem>>, %arg8: memref<16x64xf32, #tpu.memory_space<vmem>>, %arg9: memref<64x128xf32, #tpu.memory_space<vmem>>, %arg10: memref<64x128xf32, #tpu.memory_space<vmem>>, %arg11: memref<1x128xf32, #tpu.memory_space<vmem>>, %arg12: memref<16x128xf32, #tpu.memory_space<vmem>>) attributes {dimension_semantics = [#tpu.dimension_semantics<parallel>], iteration_bounds = array<i64: 2>, scalar_prefetch = 0 : i64, scratch_operands = 0 : i64, tpu.core_type = #tpu.core_type<tc>, window_params = [{transform_indices = @transform_0, window_bounds = array<i64: 16, 16, 4>}, {transform_indices = @transform_1, window_bounds = array<i64: 16, 1>}, {pipeline_mode = #tpu.pipeline_mode<synchronous>, transform_indices = @transform_2, window_bounds = array<i64: 4, 16>}, {pipeline_mode = #tpu.pipeline_mode<synchronous>, transform_indices = @transform_3, window_bounds = array<i64: 3, 16>}, {pipeline_mode = #tpu.pipeline_mode<synchronous>, transform_indices = @transform_4, window_bounds = array<i64: 16, 16>}, {pipeline_mode = #tpu.pipeline_mode<synchronous>, transform_indices = @transform_5, window_bounds = array<i64: 16, 64>}, {pipeline_mode = #tpu.pipeline_mode<synchronous>, transform_indices = @transform_6, window_bounds = array<i64: 16, 64>}, {pipeline_mode = #tpu.pipeline_mode<synchronous>, transform_indices = @transform_7, window_bounds = array<i64: 16, 64>}, {pipeline_mode = #tpu.pipeline_mode<synchronous>, transform_indices = @transform_8, window_bounds = array<i64: 64, 128>}, {pipeline_mode = #tpu.pipeline_mode<synchronous>, transform_indices = @transform_9, window_bounds = array<i64: 64, 128>}, {pipeline_mode = #tpu.pipeline_mode<synchronous>, transform_indices = @transform_10, window_bounds = array<i64: 1, 128>}, {transform_indices = @transform_11, window_bounds = array<i64: 16, 128>}]} {
    %c0 = arith.constant 0 : index
    %c0_0 = arith.constant 0 : index
    %c0_1 = arith.constant 0 : index
    %0 = vector.load %arg1[%c0, %c0_0, %c0_1] : memref<16x16x4xf32, #tpu.memory_space<vmem>>, vector<16x16x4xf32>
    %c0_2 = arith.constant 0 : index
    %c0_3 = arith.constant 0 : index
    %1 = vector.load %arg2[%c0_2, %c0_3] : memref<16x1xf32, #tpu.memory_space<vmem>>, vector<16x1xf32>
    %cst = arith.constant 1.000000e+00 : f32
    %2 = vector.broadcast %cst : f32 to vector<16x1xf32>
    %3 = arith.maximumf %1, %2 : vector<16x1xf32>
    %cst_4 = arith.constant 1.000000e+00 : f32
    %4 = vector.broadcast %cst_4 : f32 to vector<16x1xf32>
    %5 = arith.divf %4, %3 : vector<16x1xf32>
    %6 = tpu.iota {dimensions = array<i32: 1>} : vector<16x16xi32>
    %7 = arith.sitofp %6 : vector<16x16xi32> to vector<16x16xf32>
    %8 = vector.broadcast %1 : vector<16x1xf32> to vector<16x16xf32>
    %9 = arith.cmpf ogt, %8, %7 : vector<16x16xf32>
    %10 = arith.extui %9 : vector<16x16xi1> to vector<16x16xi32>
    %11 = arith.sitofp %10 : vector<16x16xi32> to vector<16x16xf32>
    %12 = vector.shape_cast %11 : vector<16x16xf32> to vector<16x16x1xf32>
    %13 = vector.extract_strided_slice %0 {offsets = [0, 0, 0], sizes = [16, 16, 3], strides = [1, 1, 1]} : vector<16x16x4xf32> to vector<16x16x3xf32>
    %cst_5 = arith.constant dense<0.000000e+00> : vector<16x3xf32>
    %14 = vector.multi_reduction <add>, %13, %cst_5 [1] : vector<16x16x3xf32> to vector<16x3xf32>
    %15 = vector.broadcast %5 : vector<16x1xf32> to vector<16x3xf32>
    %16 = arith.mulf %14, %15 : vector<16x3xf32>
    %17 = vector.shape_cast %0 : vector<16x16x4xf32> to vector<256x4xf32>
    %c0_6 = arith.constant 0 : index
    %c0_7 = arith.constant 0 : index
    %18 = vector.load %arg3[%c0_6, %c0_7] : memref<4x16xf32, #tpu.memory_space<vmem>>, vector<4x16xf32>
    %cst_8 = arith.constant dense<0.000000e+00> : vector<256x16xf32>
    %19 = tpu.matmul %17, %18, %cst_8 {dimension_numbers = #tpu.dot_dimension_numbers<[1], [0], [0], [1], [0, 0, 1, 1], [], []>} : vector<256x4xf32>, vector<4x16xf32>, vector<256x16xf32> -> vector<256x16xf32>
    %20 = vector.shape_cast %19 : vector<256x16xf32> to vector<16x16x16xf32>
    %c0_9 = arith.constant 0 : index
    %c0_10 = arith.constant 0 : index
    %21 = vector.load %arg4[%c0_9, %c0_10] : memref<3x16xf32, #tpu.memory_space<vmem>>, vector<3x16xf32>
    %cst_11 = arith.constant dense<0.000000e+00> : vector<16x16xf32>
    %22 = tpu.matmul %16, %21, %cst_11 {dimension_numbers = #tpu.dot_dimension_numbers<[1], [0], [0], [1], [0, 0, 1, 1], [], []>} : vector<16x3xf32>, vector<3x16xf32>, vector<16x16xf32> -> vector<16x16xf32>
    %23 = vector.shape_cast %22 : vector<16x16xf32> to vector<16x1x16xf32>
    %24 = vector.broadcast %23 : vector<16x1x16xf32> to vector<16x16x16xf32>
    %25 = arith.subf %20, %24 : vector<16x16x16xf32>
    %c0_12 = arith.constant 0 : index
    %c0_13 = arith.constant 0 : index
    %26 = vector.load %arg5[%c0_12, %c0_13] : memref<16x16xf32, #tpu.memory_space<vmem>>, vector<16x16xf32>
    %27 = vector.shape_cast %26 : vector<16x16xf32> to vector<1x16x16xf32>
    %28 = vector.broadcast %27 : vector<1x16x16xf32> to vector<16x16x16xf32>
    %29 = arith.addf %25, %28 : vector<16x16x16xf32>
    %cst_14 = arith.constant 0.000000e+00 : f32
    %30 = vector.broadcast %cst_14 : f32 to vector<16x16x16xf32>
    %31 = arith.maximumf %29, %30 : vector<16x16x16xf32>
    %cst_15 = arith.constant dense<0xFF800000> : vector<16x16xf32>
    %32 = vector.multi_reduction <maximumf>, %31, %cst_15 [1] : vector<16x16x16xf32> to vector<16x16xf32>
    %33 = vector.shape_cast %31 : vector<16x16x16xf32> to vector<256x16xf32>
    %c0_16 = arith.constant 0 : index
    %c0_17 = arith.constant 0 : index
    %34 = vector.load %arg6[%c0_16, %c0_17] : memref<16x64xf32, #tpu.memory_space<vmem>>, vector<16x64xf32>
    %cst_18 = arith.constant dense<0.000000e+00> : vector<256x64xf32>
    %35 = tpu.matmul %33, %34, %cst_18 {dimension_numbers = #tpu.dot_dimension_numbers<[1], [0], [0], [1], [0, 0, 1, 1], [], []>} : vector<256x16xf32>, vector<16x64xf32>, vector<256x64xf32> -> vector<256x64xf32>
    %36 = vector.shape_cast %35 : vector<256x64xf32> to vector<16x16x64xf32>
    %c0_19 = arith.constant 0 : index
    %c0_20 = arith.constant 0 : index
    %37 = vector.load %arg7[%c0_19, %c0_20] : memref<16x64xf32, #tpu.memory_space<vmem>>, vector<16x64xf32>
    %cst_21 = arith.constant dense<0.000000e+00> : vector<16x64xf32>
    %38 = tpu.matmul %32, %37, %cst_21 {dimension_numbers = #tpu.dot_dimension_numbers<[1], [0], [0], [1], [0, 0, 1, 1], [], []>} : vector<16x16xf32>, vector<16x64xf32>, vector<16x64xf32> -> vector<16x64xf32>
    %39 = vector.shape_cast %38 : vector<16x64xf32> to vector<16x1x64xf32>
    %40 = vector.broadcast %39 : vector<16x1x64xf32> to vector<16x16x64xf32>
    %41 = arith.addf %36, %40 : vector<16x16x64xf32>
    %42 = vector.broadcast %12 : vector<16x16x1xf32> to vector<16x16x64xf32>
    %43 = arith.mulf %42, %41 : vector<16x16x64xf32>
    %c0_22 = arith.constant 0 : index
    %c0_23 = arith.constant 0 : index
    %44 = vector.load %arg8[%c0_22, %c0_23] : memref<16x64xf32, #tpu.memory_space<vmem>>, vector<16x64xf32>
    %45 = vector.shape_cast %44 : vector<16x64xf32> to vector<1x16x64xf32>
    %46 = vector.broadcast %45 : vector<1x16x64xf32> to vector<16x16x64xf32>
    %47 = arith.addf %43, %46 : vector<16x16x64xf32>
    %cst_24 = arith.constant 0.000000e+00 : f32
    %48 = vector.broadcast %cst_24 : f32 to vector<16x16x64xf32>
    %49 = arith.maximumf %47, %48 : vector<16x16x64xf32>
    %cst_25 = arith.constant dense<0xFF800000> : vector<16x64xf32>
    %50 = vector.multi_reduction <maximumf>, %49, %cst_25 [1] : vector<16x16x64xf32> to vector<16x64xf32>
    %51 = vector.shape_cast %49 : vector<16x16x64xf32> to vector<256x64xf32>
    %c0_26 = arith.constant 0 : index
    %c0_27 = arith.constant 0 : index
    %52 = vector.load %arg9[%c0_26, %c0_27] : memref<64x128xf32, #tpu.memory_space<vmem>>, vector<64x128xf32>
    %cst_28 = arith.constant dense<0.000000e+00> : vector<256x128xf32>
    %53 = tpu.matmul %51, %52, %cst_28 {dimension_numbers = #tpu.dot_dimension_numbers<[1], [0], [0], [1], [0, 0, 1, 1], [], []>} : vector<256x64xf32>, vector<64x128xf32>, vector<256x128xf32> -> vector<256x128xf32>
    %54 = vector.shape_cast %53 : vector<256x128xf32> to vector<16x16x128xf32>
    %c0_29 = arith.constant 0 : index
    %c0_30 = arith.constant 0 : index
    %55 = vector.load %arg10[%c0_29, %c0_30] : memref<64x128xf32, #tpu.memory_space<vmem>>, vector<64x128xf32>
    %cst_31 = arith.constant dense<0.000000e+00> : vector<16x128xf32>
    %56 = tpu.matmul %50, %55, %cst_31 {dimension_numbers = #tpu.dot_dimension_numbers<[1], [0], [0], [1], [0, 0, 1, 1], [], []>} : vector<16x64xf32>, vector<64x128xf32>, vector<16x128xf32> -> vector<16x128xf32>
    %57 = vector.shape_cast %56 : vector<16x128xf32> to vector<16x1x128xf32>
    %58 = vector.broadcast %57 : vector<16x1x128xf32> to vector<16x16x128xf32>
    %59 = arith.addf %54, %58 : vector<16x16x128xf32>
    %60 = vector.broadcast %12 : vector<16x16x1xf32> to vector<16x16x128xf32>
    %61 = arith.mulf %60, %59 : vector<16x16x128xf32>
    %c0_32 = arith.constant 0 : index
    %c0_33 = arith.constant 0 : index
    %62 = vector.load %arg11[%c0_32, %c0_33] : memref<1x128xf32, #tpu.memory_space<vmem>>, vector<1x128xf32>
    %63 = vector.shape_cast %62 : vector<1x128xf32> to vector<1x1x128xf32>
    %64 = vector.broadcast %63 : vector<1x1x128xf32> to vector<16x16x128xf32>
    %65 = arith.addf %61, %64 : vector<16x16x128xf32>
    %cst_34 = arith.constant 0.000000e+00 : f32
    %66 = vector.broadcast %cst_34 : f32 to vector<16x16x128xf32>
    %67 = arith.maximumf %65, %66 : vector<16x16x128xf32>
    %68 = vector.broadcast %12 : vector<16x16x1xf32> to vector<16x16x128xf32>
    %69 = arith.mulf %67, %68 : vector<16x16x128xf32>
    %cst_35 = arith.constant dense<0xFF800000> : vector<16x128xf32>
    %70 = vector.multi_reduction <maximumf>, %69, %cst_35 [1] : vector<16x16x128xf32> to vector<16x128xf32>
    %c0_36 = arith.constant 0 : index
    %c0_37 = arith.constant 0 : index
    %71 = vector.load %arg12[%c0_36, %c0_37] : memref<16x128xf32, #tpu.memory_space<vmem>>, vector<16x128xf32>
    tpu.vector_store %arg12[%c0_36, %c0_37], %70 {strides = array<i32>} : memref<16x128xf32, #tpu.memory_space<vmem>>, vector<16x128xf32>,
    return
  }
  func.func @transform_0(%arg0: i32) -> (i32, i32, i32) {
    %c0_i32 = arith.constant 0 : i32
    %c0_i32_0 = arith.constant 0 : i32
    %c0_i32_1 = arith.constant 0 : i32
    return %arg0, %c0_i32, %c0_i32_0 : i32, i32, i32
  }
  func.func @transform_1(%arg0: i32) -> (i32, i32) {
    %c0_i32 = arith.constant 0 : i32
    %c0_i32_0 = arith.constant 0 : i32
    return %arg0, %c0_i32 : i32, i32
  }
  func.func @transform_2(%arg0: i32) -> (i32, i32) {
    %c0_i32 = arith.constant 0 : i32
    %c0_i32_0 = arith.constant 0 : i32
    %c0_i32_1 = arith.constant 0 : i32
    return %c0_i32, %c0_i32_0 : i32, i32
  }
  func.func @transform_3(%arg0: i32) -> (i32, i32) {
    %c0_i32 = arith.constant 0 : i32
    %c0_i32_0 = arith.constant 0 : i32
    %c0_i32_1 = arith.constant 0 : i32
    return %c0_i32, %c0_i32_0 : i32, i32
  }
  func.func @transform_4(%arg0: i32) -> (i32, i32) {
    %c0_i32 = arith.constant 0 : i32
    %c0_i32_0 = arith.constant 0 : i32
    %c0_i32_1 = arith.constant 0 : i32
    return %c0_i32, %c0_i32_0 : i32, i32
  }
  func.func @transform_5(%arg0: i32) -> (i32, i32) {
    %c0_i32 = arith.constant 0 : i32
    %c0_i32_0 = arith.constant 0 : i32
    %c0_i32_1 = arith.constant 0 : i32
    return %c0_i32, %c0_i32_0 : i32, i32
  }
  func.func @transform_6(%arg0: i32) -> (i32, i32) {
    %c0_i32 = arith.constant 0 : i32
    %c0_i32_0 = arith.constant 0 : i32
    %c0_i32_1 = arith.constant 0 : i32
    return %c0_i32, %c0_i32_0 : i32, i32
  }
  func.func @transform_7(%arg0: i32) -> (i32, i32) {
    %c0_i32 = arith.constant 0 : i32
    %c0_i32_0 = arith.constant 0 : i32
    %c0_i32_1 = arith.constant 0 : i32
    return %c0_i32, %c0_i32_0 : i32, i32
  }
  func.func @transform_8(%arg0: i32) -> (i32, i32) {
    %c0_i32 = arith.constant 0 : i32
    %c0_i32_0 = arith.constant 0 : i32
    %c0_i32_1 = arith.constant 0 : i32
    return %c0_i32, %c0_i32_0 : i32, i32
  }
  func.func @transform_9(%arg0: i32) -> (i32, i32) {
    %c0_i32 = arith.constant 0 : i32
    %c0_i32_0 = arith.constant 0 : i32
    %c0_i32_1 = arith.constant 0 : i32
    return %c0_i32, %c0_i32_0 : i32, i32
  }
  func.func @transform_10(%arg0: i32) -> (i32, i32) {
    %c0_i32 = arith.constant 0 : i32
    %c0_i32_0 = arith.constant 0 : i32
    %c0_i32_1 = arith.constant 0 : i32
    return %c0_i32, %c0_i32_0 : i32, i32
  }
  func.func @transform_11(%arg0: i32) -> (i32, i32) {
    %c0_i32 = arith.constant 0 : i32
    %c0_i32_0 = arith.constant 0 : i32
    return %arg0, %c0_i32 : i32, i32
  }
}

</mosaic_0001>

<bundles_post_ra>
// kernel: tpu_custom_call.1
= control target key start
LH: loop header
LB: loop body
LE: loop exit
PB: predicated region body
PF: predicated region fallthrough
CT: control target
= control target key end

     0   :  { %s5846_s0 = inlined_call_operand.vmem [shape: f32[32,16,4], index: 0, kind: input, shape index: {}]   ;;  %s5847_s1 = inlined_call_operand.vmem [shape: f32[32,1], index: 1, kind: input, shape index: {}]   ;;  %s5848_s2 = inlined_call_operand.vmem [shape: f32[4,16], index: 2, kind: input, shape index: {}]   ;;  %s5849_s3 = inlined_call_operand.vmem [shape: f32[3,16], index: 3, kind: input, shape index: {}]   ;;  %s5850_s4 = inlined_call_operand.vmem [shape: f32[16,16], index: 4, kind: input, shape index: {}]   ;;  %s5851_s5 = inlined_call_operand.vmem [shape: f32[16,64], index: 5, kind: input, shape index: {}]   ;;  %s5852_s6 = inlined_call_operand.vmem [shape: f32[16,64], index: 6, kind: input, shape index: {}]   ;;  %s5853_s7 = inlined_call_operand.vmem [shape: f32[16,64], index: 7, kind: input, shape index: {}]   ;;  %s5854_s8 = inlined_call_operand.vmem [shape: f32[64,128], index: 8, kind: input, shape index: {}]   ;;  %s5855_s9 = inlined_call_operand.vmem [shape: f32[64,128], index: 9, kind: input, shape index: {}]   ;;  %s5856_s10 = inlined_call_operand.vmem [shape: f32[1,128], index: 10, kind: input, shape index: {}]   ;;  %s5857_s11 = inlined_call_operand.hbm [shape: f32[32,128], index: 11, kind: output, shape index: {}]  }
   0x1   :  { %5925 = sst [smem:[#allocation36_spill]] %s5846_s0 }
   0x2   :  { %16 = vsyncpa [#allocation3], 0 }
   0x3   :  { %18 = vsyncpa [#allocation3 + $0x1], 0  ;;  %s4275_s17 = smov 0   ;;  %s4277_s18 = smov 0  }
   0x4   :  { %s4279_s19 = smov 0   ;;  %s4281_s20 = smov 0  }
   0x5 LB: > { %s4296_s21 = sadd.s32 4294967295, %s4207_s20   ;;  %s3648_s22 = sadd.s32 4294967294, %s4207_s20   ;;  %s4207_s20 = sphi %s4281_s20, %s6023_s20   ;;  %s4203_s19 = sphi %s4279_s19, %s6022_s19   ;;  %s4199_s18 = sphi %s4277_s18, %s6021_s18   ;;  %s4195_s17 = sphi %s4275_s17, %s6020_s17  }
   0x6   : > { %s4300_s23 = sadd.s32 1, %s4207_s20   ;;  %s272_s24 = sadd.s32 1, %s4203_s19 }
   0x7   : > { %s269_s25 = ssub.s32 %s4207_s20, %s4300_s23  ;;  %p282_p0 = scmp.ne.s32.totalorder %s4203_s19, %s4199_s18 }
   0x8   : > { %p270_p1 = scmp.eq.s32.totalorder %s269_s25, 0  ;;  %p283_p2 = scmp.eq.s32.totalorder %s4296_s21, 1 }
   0x9   : > { %p288_p3 = scmp.ne.s32.totalorder %s4199_s18, %s4195_s17  ;;  %p289_p4 = scmp.eq.s32.totalorder %s3648_s22, 1 }
   0xa   : > { %s4311_s26 = scalar_select %p270_p1, %s4203_s19, %s272_s24  }
   0xb   : > { %p4313_p5 = por %p283_p2, %p282_p0  ;;  %p4317_p6 = por %p289_p4, %p288_p3 }
   0xc   : > { %p3651_p7 = scmp.ge.s32.totalorder %s4207_s20, 1  ;;  %p353_p8 = scmp.lt.s32.totalorder %s4207_s20, 3 }
   0xe   : > { %p354_p9 = pnand %p3651_p7, %p353_p8 }
  0x10   : > { %357 = sbr.rel (%p354_p9) target bundleno = 1048 (0x418), region = 64 }
  0x15   : > { %s3656_s29 = sshll.u32 %s4296_s21, 1  ;;  %v847_v0 = vld [vmem:[%s5848_s2] sm:$0xf]  ;;  %vm945_vm0 = vcmask 1043456   ;;  %s3653_s13 = sshll.u32 %s4296_s21, 4  ;;  %v4209_v1 = vmov 0  }
  0x16   : > { %4141 = vset.pattern.permute.xlu0 %v4209_v1  ;;  %p407_p10 = scmp.lt.s32.totalorder %s3656_s29, 3  ;;  %3896 = vmatprep.subr.msk.mxu0 %vm945_vm0, %v847_v0  ;;  %p400_p11 = scmp.lt.s32.totalorder %s3653_s13, 31  ;;  %vm648_vm1 = vcmask 23552   ;;  %vm848_vm2 = vcmask 31744   ;;  %vm1230_vm3 = vcmask 1042432   ;;  %vm1192_vm4 = vcmask 1041409  }
  0x17   : > { %3897 = vmatpush3.msk.msra.mxu0 %vm945_vm0, %v847_v0  ;;  %4142 = vset.pattern.permute.xlu1 %v4209_v1  ;;  %s5928_s0 = sld [smem:[#allocation36_spill]]  ;;  %vm1195_vm5 = vcmask 1042434   ;;  %vm1198_vm6 = vcmask 1043459   ;;  %vm1201_vm7 = vcmask 1044484   ;;  %vm1204_vm8 = vcmask 1045509  }
  0x18   : > { %s6025_s29 = smov (!%p407_p10, %s3656_s29), 3  ;;  %s6027_s13 = smov (!%p400_p11, %s3653_s13), 31  ;;  %vm1207_vm9 = vcmask 1046534   ;;  %vm1210_vm10 = vcmask 1047559   ;;  %vm1587_vm13 = vcmask 130048   ;;  %vm2476_vm14 = vcmask 523264  }
  0x19   : > { %s3657_s14 = sshll.u32 %s6025_s29, 3  ;;  %s3770_s24 = sshll.u32 %s6027_s13, 4 }
  0x1a   : > { %s410_s22 = scalar_lea.vmem %s5847_s1, %s3657_s14  ;;  %s396_s14 = sand.u32 1, %s4199_s18  }
  0x1b   : > { %v445_v2 = vld [vmem:[%s410_s22] sm:$0xff]  ;;  %v446_v3 = vld [vmem:[%s410_s22 + $0x8] sm:$0xff]  ;;  %s3652_s15 = sshll.u32 %s396_s14, 4  ;;  %s3771_s22 = sshll.u32 %s4296_s21, 8 }
  0x1c   : > { %v447_v4 = vmax.f32 %v445_v2, 1.0  ;;  %v448_v5 = vmax.f32 %v446_v3, 1.0  ;;  %458 = vperm.xlu1 %4142, %v445_v2   ;;  %s398_s16 = scalar_lea.vmem [#allocation2], %s3652_s15  ;;  %s5806_s21 = scalar_lea.sflag [#allocation3], %s396_s14 }
  0x1d   : > { %s4334_s12 = scalar_lea.vmem %s5928_s0, %s3770_s24  ;;  %s3574_s24 = sshll.u32 %s398_s16, 4  ;;  %s5800_s24 = int_to_ptr.vmem [resolvable:$true] %s3574_s24 }
  0x1e   : > { %v413_v6 = vld [vmem:[%s4334_s12] sm:$0xff]  ;;  %v414_v7 = vld [vmem:[%s4334_s12 + $0x8] sm:$0xff]  ;;  %v415_v8 = vld [vmem:[%s4334_s12 + $0x10] sm:$0xff]  ;;  %4143 = vrcp.f32 %v447_v4  ;;  %s4147_s29 = scalar_lea.vmem %s5800_s24, 256  ;;  %s4212_s13 = smov [#allocation2]  }
  0x1f   : > { %v649_v9 = vsel %vm648_vm1, %v413_v6, 0.0  ;;  %v650_v10 = vsel %vm648_vm1, %v414_v7, 0.0  ;;  %3898 = vmatprep.mubr.msk.f32.mxu0 %vm848_vm2, %v413_v6  ;;  %v658_v11 = vsel %vm648_vm1, %v415_v8, 0.0  ;;  %v416_v12 = vld [vmem:[%s4334_s12 + $0x18] sm:$0xff]  ;;  %v417_v13 = vld [vmem:[%s4334_s12 + $0x20] sm:$0xff]  ;;  %v418_v17 = vld [vmem:[%s4334_s12 + $0x28] sm:$0xff]  ;;  %4145 = vrcp.f32 %v448_v5  ;;  %p4148_p12 = scmp.ne.s32.totalorder %s5800_s24, %s4147_s29 }
  0x20   : > { %v4345_v14 = vadd.f32 %v650_v10, %v649_v9  ;;  %3899 = vmatmul.mubr.msk.f32.vlgmr.msra.gmra.mxu0 %vm848_vm2, %v414_v7  ;;  %v659_v15 = vsel %vm648_vm1, %v416_v12, 0.0  ;;  %v667_v16 = vsel %vm648_vm1, %v417_v13, 0.0  ;;  %v419_v18 = vld [vmem:[%s4334_s12 + $0x30] sm:$0xff]  ;;  %v420_v19 = vld [vmem:[%s4334_s12 + $0x38] sm:$0xff]  ;;  %v668_v21 = vsel %vm648_vm1, %v418_v17, 0.0  ;;  %v421_v23 = vld [vmem:[%s4334_s12 + $0x40] sm:$0xff]  ;;  %463 = vperm.xlu1 %4142, %v446_v3  }
  0x21   : > { %3901 = vmatprep.mubr.msk.f32.mxu0 %vm848_vm2, %v415_v8  ;;  %v4354_v20 = vadd.f32 %v659_v15, %v658_v11  ;;  %v676_v22 = vsel %vm648_vm1, %v419_v18, 0.0  ;;  %v423_v24 = vld [vmem:[%s4334_s12 + $0x50] sm:$0xff]  ;;  %v424_v25 = vld [vmem:[%s4334_s12 + $0x58] sm:$0xff]  ;;  %v4361_v26 = vadd.f32 %v668_v21, %v667_v16  ;;  %v677_v27 = vsel %vm648_vm1, %v420_v19, 0.0  ;;  %v422_v29 = vld [vmem:[%s4334_s12 + $0x48] sm:$0xff]  ;;  %p4149_p13 = pnand %p4148_p12, %p4313_p5  ;;  %s4151_s15 = sshll.u32 %s4212_s13, 4  ;;  %s4152_s15 = int_to_ptr.vmem [resolvable:$false] %s4151_s15 }
  0x22   : > { %v685_v28 = vsel %vm648_vm1, %v421_v23, 0.0  ;;  %v425_v30 = vld [vmem:[%s4334_s12 + $0x60] sm:$0xff]  ;;  %v4367_v31 = vadd.f32 %v677_v27, %v676_v22  ;;  %v686_v32 = vsel %vm648_vm1, %v422_v29, 0.0  ;;  %v694_v33 = vsel %vm648_vm1, %v423_v24, 0.0  ;;  %v426_v34 = vld [vmem:[%s4334_s12 + $0x68] sm:$0xff]  ;;  %v427_v40 = vld [vmem:[%s4334_s12 + $0x70] sm:$0xff]  ;;  %p4154_p1 = scmp.lt.s32.totalorder %s5800_s24, %s4152_s15 }
  0x23   : > { %v4373_v35 = vadd.f32 %v686_v32, %v685_v28  ;;  %v695_v36 = vsel %vm648_vm1, %v424_v25, 0.0  ;;  %v703_v38 = vsel %vm648_vm1, %v425_v30, 0.0  ;;  %v704_v39 = vsel %vm648_vm1, %v426_v34, 0.0  ;;  %v428_v42 = vld [vmem:[%s4334_s12 + $0x78] sm:$0xff]  ;;  %v429_v45 = vld [vmem:[%s4334_s12 + $0x80] sm:$0xff]  ;;  %v430_v47 = vld [vmem:[%s4334_s12 + $0x88] sm:$0xff]  ;;  %p4150_p0 = pneg %p4149_p13 }
  0x24   : > { %3902 = vmatmul.mubr.msk.f32.gmra.mxu0 %vm848_vm2, %v416_v12  ;;  %v4377_v37 = vadd.f32 %v695_v36, %v694_v33  ;;  %v4382_v41 = vadd.f32 %v704_v39, %v703_v38  ;;  %v712_v43 = vsel %vm648_vm1, %v427_v40, 0.0  ;;  %v713_v44 = vsel %vm648_vm1, %v428_v42, 0.0  ;;  %v431_v49 = vld [vmem:[%s4334_s12 + $0x90] sm:$0xff]  ;;  %v432_v51 = vld [vmem:[%s4334_s12 + $0x98] sm:$0xff]  ;;  %v433_v52 = vld [vmem:[%s4334_s12 + $0xa0] sm:$0xff] }
  0x25   : > { %3904 = vmatprep.mubr.msk.f32.mxu0 %vm848_vm2, %v417_v13  ;;  %v4391_v46 = vadd.f32 %v713_v44, %v712_v43  ;;  %v721_v50 = vsel %vm648_vm1, %v429_v45, 0.0  ;;  %v722_v54 = vsel %vm648_vm1, %v430_v47, 0.0  ;;  %v434_v55 = vld [vmem:[%s4334_s12 + $0xa8] sm:$0xff]  ;;  %v730_v57 = vsel %vm648_vm1, %v431_v49, 0.0  ;;  %v435_v58 = vld [vmem:[%s4334_s12 + $0xb0] sm:$0xff]  ;;  %v436_v59 = vld [vmem:[%s4334_s12 + $0xb8] sm:$0xff] }
  0x26   : > { %v4402_v56 = vadd.f32 %v722_v54, %v721_v50  ;;  %v731_v60 = vsel %vm648_vm1, %v432_v51, 0.0  ;;  %v739_v61 = vsel %vm648_vm1, %v433_v52, 0.0  ;;  %v740_v63 = vsel %vm648_vm1, %v434_v55, 0.0  ;;  %v437_v4 = vld [vmem:[%s4334_s12 + $0xc0] sm:$0xff]  ;;  %v438_v5 = vld [vmem:[%s4334_s12 + $0xc8] sm:$0xff]  ;;  %v439_v6 = vld [vmem:[%s4334_s12 + $0xd0] sm:$0xff] }
  0x27   : > { %v4410_v62 = vadd.f32 %v731_v60, %v730_v57  ;;  %v4413_v0 = vadd.f32 %v740_v63, %v739_v61  ;;  %v748_v1 = vsel %vm648_vm1, %v435_v58, 0.0  ;;  %v749_v2 = vsel %vm648_vm1, %v436_v59, 0.0  ;;  %v440_v7 = vld [vmem:[%s4334_s12 + $0xd8] sm:$0xff]  ;;  %v1174_v10 = vld [vmem:[%s5849_s3] sm:$0x7]  ;;  %v442_v13 = vld [vmem:[%s4334_s12 + $0xe8] sm:$0xff] }
  0x28   : > { %3905 = vmatmul.mubr.msk.f32.gmra.mxu0 %vm848_vm2, %v418_v17  ;;  %v4418_v3 = vadd.f32 %v749_v2, %v748_v1  ;;  %v757_v8 = vsel %vm648_vm1, %v437_v4, 0.0  ;;  %v758_v9 = vsel %vm648_vm1, %v438_v5, 0.0  ;;  %v441_v12 = vld [vmem:[%s4334_s12 + $0xe0] sm:$0xff]  ;;  %v766_v15 = vsel %vm648_vm1, %v439_v6, 0.0  ;;  %3946 = vmatprep.subr.msk.mxu1 %vm1230_vm3, %v1174_v10  ;;  %v443_v17 = vld [vmem:[%s4334_s12 + $0xf0] sm:$0xff]  ;;  %v4470_v28 = vld [vmem:[%s5851_s5 + $0x8] sm:$0xff] }
  0x29   : > { %3907 = vmatprep.mubr.msk.f32.mxu0 %vm848_vm2, %v419_v18  ;;  %v4432_v11 = vadd.f32 %v758_v9, %v757_v8  ;;  %v767_v16 = vsel %vm648_vm1, %v440_v7, 0.0  ;;  %v444_v18 = vld [vmem:[%s4334_s12 + $0xf8] sm:$0xff]  ;;  %3947 = vmatpush3.msk.msra.mxu1 %vm1230_vm3, %v1174_v10  ;;  %v775_v21 = vsel %vm648_vm1, %v441_v12, 0.0  ;;  %v776_v22 = vsel %vm648_vm1, %v442_v13, 0.0  ;;  %s5798_s12 = scalar_lea.hbm %s5857_s11, %s3771_s22  ;;  %s4153_s22 = scalar_lea.vmem %s4152_s15, 512 }
  0x2a   : > { %3951 = vmatprep.subr.mxu0 %v4470_v28  ;;  %4093 = vmatprep.subr.mxu1 %v4470_v28  ;;  %v661_v32 = vrot.slane %v4354_v20, 4  ;;  %v670_v33 = vrot.slane %v4361_v26, 4  ;;  %v688_v36 = vrot.slane %v4373_v35, 4  ;;  %v697_v38 = vrot.slane %v4377_v37, 4  ;;  %p4155_p2 = scmp.lt.s32.totalorder %s4153_s22, %s4147_s29 }
  0x2b   : > { %v4144_v48 = vpop.eup %4143  ;;  %3952 = vmatpush3.msra.mxu0 %v4470_v28  ;;  %v715_v43 = vrot.slane %v4391_v46, 4  ;;  %v724_v44 = vrot.slane %v4402_v56, 4 }
  0x2c   : > { %3908 = vmatmul.mubr.msk.f32.gmra.mxu0 %vm848_vm2, %v420_v19  ;;  %795 = vperm.xlu0 %4141, %v4144_v48   ;;  %v4146_v53 = vpop.eup %4145  ;;  %v4442_v19 = vadd.f32 %v767_v16, %v766_v15  ;;  %v751_v48 = vrot.slane %v4418_v3, 4  ;;  %v671_v50 = vadd.f32 %v670_v33, %v4361_v26  ;;  %p4156_p3 = por %p4155_p2, %p4154_p1 }
  0x2d   : > { %3910 = vmatprep.mubr.msk.f32.mxu0 %vm848_vm2, %v421_v23  ;;  %v4446_v23 = vadd.f32 %v776_v22, %v775_v21  ;;  %v716_v57 = vadd.f32 %v715_v43, %v4391_v46 }
  0x2e   : > { %v672_v61 = vrot.slane %v671_v50, 2  ;;  %p4157_p4 = pnand %p4156_p3, %p4150_p0 }
  0x30   : > { %3911 = vmatmul.mubr.msk.f32.gmra.mxu0 %vm848_vm2, %v422_v29  ;;  %799 = vperm.xlu0 %4141, %v4146_v53   ;;  %v4478_v29 = vld [vmem:[%s5851_s5] sm:$0xff]  ;;  %v673_v10 = vadd.f32 %v672_v61, %v671_v50 }
  0x31   : > { %3913 = vmatprep.mubr.msk.f32.mxu0 %vm848_vm2, %v423_v24  ;;  %v784_v24 = vsel %vm648_vm1, %v443_v17, 0.0  ;;  %3953 = vmatprep.subr.mxu0 %v4478_v29 }
  0x32   : > { %3954 = vmatpush3.msra.mxu0 %v4478_v29 }
  0x34   : > { %3914 = vmatmul.mubr.msk.f32.gmra.mxu0 %vm848_vm2, %v424_v25  ;;  %v785_v25 = vsel %vm648_vm1, %v444_v18, 0.0 }
  0x35   : > { %3916 = vmatprep.mubr.msk.f32.mxu0 %vm848_vm2, %v425_v30  ;;  %v4451_v27 = vadd.f32 %v785_v25, %v784_v24  ;;  %v652_v30 = vrot.slane %v4345_v14, 4 }
  0x37   : > { %v653_v39 = vadd.f32 %v652_v30, %v4345_v14  ;;  %v787_v60 = vrot.slane %v4451_v27, 4 }
  0x38   : > { %3917 = vmatmul.mubr.msk.f32.gmra.mxu0 %vm848_vm2, %v426_v34  ;;  %v679_v34 = vrot.slane %v4367_v31, 4 }
  0x39   : > { %3919 = vmatprep.mubr.msk.f32.mxu0 %vm848_vm2, %v427_v40  ;;  %v662_v40 = vadd.f32 %v661_v32, %v4354_v20  ;;  %v689_v20 = vadd.f32 %v688_v36, %v4373_v35  ;;  %v788_v9 = vadd.f32 %v787_v60, %v4451_v27 }
  0x3a   : > { %v680_v14 = vadd.f32 %v679_v34, %v4367_v31  ;;  %v752_v31 = vadd.f32 %v751_v48, %v4418_v3  ;;  %v674_v34 = vrot.slane %v673_v10, 1 }
  0x3b   : > { %v663_v53 = vrot.slane %v662_v40, 2  ;;  %v690_v63 = vrot.slane %v689_v20, 2  ;;  %v789_v33 = vrot.slane %v788_v9, 2 }
  0x3c   : > { %3920 = vmatmul.mubr.msk.f32.gmra.mxu0 %vm848_vm2, %v428_v42  ;;  %v706_v42 = vrot.slane %v4382_v41, 4  ;;  %v753_v3 = vrot.slane %v752_v31, 2 }
  0x3d   : > { %3922 = vmatprep.mubr.msk.f32.mxu0 %vm848_vm2, %v429_v45  ;;  %v733_v45 = vrot.slane %v4410_v62, 4  ;;  %v664_v46 = vadd.f32 %v663_v53, %v662_v40 }
  0x3e   : > { %v707_v54 = vadd.f32 %v706_v42, %v4382_v41  ;;  %v681_v41 = vrot.slane %v680_v14, 2  ;;  %v754_v25 = vadd.f32 %v753_v3, %v752_v31 }
  0x3f   : > { %v665_v16 = vrot.slane %v664_v46, 1 }
  0x40   : > { %3923 = vmatmul.mubr.msk.f32.gmra.mxu0 %vm848_vm2, %v430_v47  ;;  %v742_v47 = vrot.slane %v4413_v0, 4  ;;  %v755_v48 = vrot.slane %v754_v25, 1 }
  0x41   : > { %3925 = vmatprep.mubr.msk.f32.mxu0 %vm848_vm2, %v431_v49  ;;  %v760_v49 = vrot.slane %v4432_v11, 4 }
  0x42   : > { %v743_v26 = vadd.f32 %v742_v47, %v4413_v0 }
  0x43   : > { %v761_v35 = vadd.f32 %v760_v49, %v4432_v11  ;;  %v682_v11 = vadd.f32 %v681_v41, %v680_v14  ;;  %v790_v14 = vadd.f32 %v789_v33, %v788_v9 }
  0x44   : > { %3926 = vmatmul.mubr.msk.f32.gmra.mxu0 %vm848_vm2, %v432_v51  ;;  %v698_v51 = vadd.f32 %v697_v38, %v4377_v37  ;;  %v778_v37 = vrot.slane %v4446_v23, 4 }
  0x45   : > { %3928 = vmatprep.mubr.msk.f32.mxu0 %vm848_vm2, %v433_v52  ;;  %v654_v52 = vrot.slane %v653_v39, 2  ;;  %v791_v61 = vrot.slane %v790_v14, 1 }
  0x46   : > { %v699_v1 = vrot.slane %v698_v51, 2  ;;  %v779_v8 = vadd.f32 %v778_v37, %v4446_v23  ;;  %v683_v23 = vrot.slane %v682_v11, 1 }
  0x47   : > { %v655_v2 = vadd.f32 %v654_v52, %v653_v39  ;;  %v666_v39 = vadd.f32 %v665_v16, %v664_v46 }
  0x48   : > { %3929 = vmatmul.mubr.msk.f32.gmra.mxu0 %vm848_vm2, %v434_v55  ;;  %v769_v55 = vrot.slane %v4442_v19, 4  ;;  %v780_v32 = vrot.slane %v779_v8, 2 }
  0x49   : > { %3931 = vmatprep.mubr.msk.f32.mxu0 %vm848_vm2, %v435_v58  ;;  %v725_v58 = vadd.f32 %v724_v44, %v4402_v56  ;;  %v656_v15 = vrot.slane %v655_v2, 1 }
  0x4a   : > { %v770_v56 = vadd.f32 %v769_v55, %v4442_v19  ;;  %v781_v50 = vadd.f32 %v780_v32, %v779_v8 }
  0x4b   : > { %v657_v38 = vadd.f32 %v656_v15, %v655_v2 }
  0x4c   : > { %3932 = vmatmul.mubr.msk.f32.gmra.mxu0 %vm848_vm2, %v436_v59  ;;  %v734_v59 = vadd.f32 %v733_v45, %v4410_v62  ;;  %v717_v62 = vrot.slane %v716_v57, 2  ;;  %v782_v60 = vrot.slane %v781_v50, 1 }
  0x4d   : > { %3934 = vmatprep.mubr.msk.f32.mxu0 %vm848_vm2, %v437_v4  ;;  %v708_v4 = vrot.slane %v707_v54, 2 }
  0x4e   : > { %v735_v0 = vrot.slane %v734_v59, 2  ;;  %v718_v24 = vadd.f32 %v717_v62, %v716_v57 }
  0x50   : > { %3935 = vmatmul.mubr.msk.f32.gmra.mxu0 %vm848_vm2, %v438_v5  ;;  %v726_v5 = vrot.slane %v725_v58, 2  ;;  %v736_v19 = vadd.f32 %v735_v0, %v734_v59  ;;  %v719_v47 = vrot.slane %v718_v24, 1 }
  0x51   : > { %3937 = vmatprep.mubr.msk.f32.mxu0 %vm848_vm2, %v439_v6  ;;  %v744_v6 = vrot.slane %v743_v26, 2 }
  0x52   : > { %v727_v21 = vadd.f32 %v726_v5, %v725_v58  ;;  %v737_v44 = vrot.slane %v736_v19, 1 }
  0x53   : > { %v745_v22 = vadd.f32 %v744_v6, %v743_v26  ;;  %v720_v26 = vadd.f32 %v719_v47, %v718_v24 }
  0x54   : > { %3938 = vmatmul.mubr.msk.f32.gmra.mxu0 %vm848_vm2, %v440_v7  ;;  %v762_v7 = vrot.slane %v761_v35, 2  ;;  %v728_v43 = vrot.slane %v727_v21, 1  ;;  %v738_v58 = vadd.f32 %v737_v44, %v736_v19 }
  0x55   : > { %3940 = vmatprep.mubr.msk.f32.mxu0 %vm848_vm2, %v441_v12  ;;  %v691_v12 = vadd.f32 %v690_v63, %v689_v20  ;;  %v746_v45 = vrot.slane %v745_v22, 1  ;;  %v675_v20 = vadd.f32 %v674_v34, %v673_v10  ;;  %v783_v10 = vadd.f32 %v782_v60, %v781_v50 }
  0x56   : > { %v763_v30 = vadd.f32 %v762_v7, %v761_v35  ;;  %v729_v57 = vadd.f32 %v728_v43, %v727_v21  ;;  %v756_v35 = vadd.f32 %v755_v48, %v754_v25 }
  0x57   : > { %v692_v36 = vrot.slane %v691_v12, 1  ;;  %v747_v59 = vadd.f32 %v746_v45, %v745_v22 }
  0x58   : > { %3941 = vmatmul.mubr.msk.f32.gmra.mxu0 %vm848_vm2, %v442_v13  ;;  %v700_v13 = vadd.f32 %v699_v1, %v698_v51  ;;  %v764_v49 = vrot.slane %v763_v30, 1  ;;  %v684_v51 = vadd.f32 %v683_v23, %v682_v11  ;;  %v792_v11 = vadd.f32 %v791_v61, %v790_v14 }
  0x59   : > { %3943 = vmatprep.mubr.msk.f32.mxu0 %vm848_vm2, %v443_v17  ;;  %v709_v17 = vadd.f32 %v708_v4, %v707_v54  ;;  %v693_v52 = vadd.f32 %v692_v36, %v691_v12 }
  0x5a   : > { %v701_v27 = vrot.slane %v700_v13, 1  ;;  %v765_v37 = vadd.f32 %v764_v49, %v763_v30 }
  0x5b   : > { %v710_v40 = vrot.slane %v709_v17, 1 }
  0x5c   : > { %3944 = vmatmul.mubr.msk.f32.gmra.mxu0 %vm848_vm2, %v444_v18  ;;  %v771_v18 = vrot.slane %v770_v56, 2  ;;  %v702_v53 = vadd.f32 %v701_v27, %v700_v13 }
  0x5d   : > { %v711_v54 = vadd.f32 %v710_v40, %v709_v17 }
  0x5e   : > { %v772_v42 = vadd.f32 %v771_v18, %v770_v56 }
  0x60   : > { %v773_v55 = vrot.slane %v772_v42, 1 }
  0x62   : > { %v774_v62 = vadd.f32 %v773_v55, %v772_v42 }
  0xa7   : > { %v796_v31 = vpop.permute.xlu0 %795 }
  0xa8   : > { %v801_v41 = vrot.slane %v796_v31, 1  ;;  %v802_v63 = vrot.slane %v796_v31, 2  ;;  %v803_v1 = vrot.slane %v796_v31, 3  ;;  %v804_v2 = vrot.slane %v796_v31, 4 }
  0xa9   : > { %v805_v46 = vrot.slane %v796_v31, 5  ;;  %v806_v4 = vrot.slane %v796_v31, 6  ;;  %v807_v56 = vrot.slane %v796_v31, 7  ;;  %v831_v8 = vmul.f32 %v796_v31, %v657_v38 }
  0xaa   : > { %v832_v5 = vmul.f32 %v801_v41, %v666_v39  ;;  %v833_v0 = vmul.f32 %v802_v63, %v675_v20  ;;  %v834_v6 = vmul.f32 %v803_v1, %v684_v51  ;;  %v835_v3 = vmul.f32 %v804_v2, %v693_v52 }
  0xab   : > { %v800_v7 = vpop.permute.xlu0 %799  ;;  %v836_v9 = vmul.f32 %v805_v46, %v702_v53  ;;  %v837_v16 = vmul.f32 %v806_v4, %v711_v54  ;;  %v838_v18 = vmul.f32 %v807_v56, %v720_v26  ;;  %v4544_v46 = vld [vmem:[%s5852_s6 + $0x8] sm:$0xff] }
  0xac   : > { %v808_v12 = vrot.slane %v800_v7, 1  ;;  %v809_v13 = vrot.slane %v800_v7, 2  ;;  %v810_v15 = vrot.slane %v800_v7, 3  ;;  %v839_v17 = vmul.f32 %v800_v7, %v729_v57  ;;  %4003 = vmatprep.subr.mxu0 %v4544_v46 }
  0xad   : > { %v1191_v21 = vrot.slane %v832_v5, 7  ;;  %v1194_v19 = vrot.slane %v833_v0, 6  ;;  %v1197_v25 = vrot.slane %v834_v6, 5  ;;  %v1200_v30 = vrot.slane %v835_v3, 4 }
  0xae   : > { %v840_v22 = vmul.f32 %v808_v12, %v738_v58  ;;  %v841_v24 = vmul.f32 %v809_v13, %v747_v59  ;;  %v842_v32 = vmul.f32 %v810_v15, %v756_v35  ;;  %v1203_v34 = vrot.slane %v836_v9, 3 }
  0xaf   : > { %v1193_v33 = vsel %vm1192_vm4, %v1191_v21, %v831_v8  ;;  %v811_v23 = vrot.slane %v800_v7, 4  ;;  %v1206_v39 = vrot.slane %v837_v16, 2  ;;  %v812_v43 = vrot.slane %v800_v7, 5 }
  0xb0   : > { %v1212_v36 = vrot.slane %v840_v22, 7  ;;  %v1214_v27 = vrot.slane %v841_v24, 6  ;;  %v1196_v38 = vsel %vm1195_vm5, %v1194_v19, %v1193_v33  ;;  %v813_v44 = vrot.slane %v800_v7, 6 }
  0xb1   : > { %v1199_v40 = vsel %vm1198_vm6, %v1197_v25, %v1196_v38  ;;  %v843_v42 = vmul.f32 %v811_v23, %v765_v37  ;;  %v1209_v47 = vrot.slane %v838_v18, 1  ;;  %v814_v48 = vrot.slane %v800_v7, 7  ;;  %v459_v7 = vpop.permute.xlu1 %458 }
  0xb2   : > { %v1202_v45 = vsel %vm1201_vm7, %v1200_v30, %v1199_v40  ;;  %v1213_v49 = vsel %vm1192_vm4, %v1212_v36, %v839_v17  ;;  %v1216_v50 = vrot.slane %v842_v32, 5  ;;  %v844_v20 = vmul.f32 %v812_v43, %v774_v62 }
  0xb3   : > { %v1205_v14 = vsel %vm1204_vm8, %v1203_v34, %v1202_v45  ;;  %v845_v51 = vmul.f32 %v813_v44, %v783_v10  ;;  %v1218_v53 = vrot.slane %v843_v42, 4  ;;  %v846_v54 = vmul.f32 %v814_v48, %v792_v11 }
  0xb4   : > { %v1208_v52 = vsel %vm1207_vm9, %v1206_v39, %v1205_v14  ;;  %v1215_v55 = vsel %vm1195_vm5, %v1214_v27, %v1213_v49  ;;  %v1220_v59 = vrot.slane %v844_v20, 3  ;;  %v453_v0 = vlaneseq }
  0xb5   : > { %v1211_v57 = vsel %vm1210_vm10, %v1209_v47, %v1208_v52  ;;  %v1217_v58 = vsel %vm1198_vm6, %v1216_v50, %v1215_v55  ;;  %v1222_v31 = vrot.slane %v845_v51, 2  ;;  %v1224_v37 = vrot.slane %v846_v54, 1  ;;  %v464_v40 = vpop.permute.xlu1 %463 }
  0xb6   : > { %3948 = vmatprep.mubr.msk.f32.mxu1 %vm648_vm1, %v1211_v57  ;;  %v1219_v26 = vsel %vm1201_vm7, %v1218_v53, %v1217_v58  ;;  %v454_v3 = vand.u32 127, %v453_v0  ;;  %v4561_v8 = vshrl.u32 %v453_v0, 7  ;;  %v4210_v12 = vmov 0.0  }
  0xb7   : > { %v1221_v35 = vsel %vm1204_vm8, %v1220_v59, %v1219_v26  ;;  %v4211_v50 = vmov 1966171168  }
  0xb8   : > { %v1223_v60 = vsel %vm1207_vm9, %v1222_v31, %v1221_v35  ;;  %v455_v9 = vcvt.s32.f32 %v454_v3  ;;  %v4566_v11 = vsub.s32 0, %v4561_v8  ;;  %v485_v19 = vsub.s32 1, %v4561_v8 }
  0xb9   : > { %v1225_v61 = vsel %vm1210_vm10, %v1224_v37, %v1223_v60  ;;  %v496_v22 = vsub.s32 2, %v4561_v8  ;;  %v507_v32 = vsub.s32 3, %v4561_v8  ;;  %v518_v23 = vsub.s32 4, %v4561_v8 }
  0xba   : > { %3949 = vmatmul.mubr.msk.f32.vlgmr.msra.gmra.mxu1 %vm648_vm1, %v1225_v61  ;;  %vm466_vm11 = vcmp.gt.f32.partialorder %v459_v7, %v455_v9  ;;  %v529_v38 = vsub.s32 5, %v4561_v8  ;;  %v540_v43 = vsub.s32 6, %v4561_v8  ;;  %vm467_vm12 = vcmp.gt.f32.partialorder %v464_v40, %v455_v9 }
  0xbb   : > { %4095 = vmatpush3.msra.mxu1 %v4470_v28  ;;  %v4568_v13 = vsel %vm466_vm11, 1.0, %v4210_v12  ;;  %v4606_v47 = vsel %vm467_vm12, 1.0, %v4210_v12  ;;  %v1313_v14 = vunpack.c.l.s4 %v4211_v50  ;;  %v551_v35 = vsub.s32 7, %v4561_v8 }
  0xbc   : > { %4094 = vmatprep.subr.mxu1 %v4478_v29  ;;  %v475_v15 = vrot.slane %v4568_v13, %v4566_v11  ;;  %v486_v25 = vrot.slane %v4568_v13, %v485_v19  ;;  %v497_v30 = vrot.slane %v4568_v13, %v496_v22  ;;  %v508_v34 = vrot.slane %v4568_v13, %v507_v32 }
  0xbd   : > { %4096 = vmatpush3.msra.mxu1 %v4478_v29  ;;  %v519_v27 = vrot.slane %v4568_v13, %v518_v23  ;;  %v530_v42 = vrot.slane %v4568_v13, %v529_v38  ;;  %v541_v45 = vrot.slane %v4568_v13, %v540_v43  ;;  %v563_v49 = vrot.slane %v4606_v47, %v4566_v11 }
  0xbe   : > { %481 = vbcast.lane.b32.xlu1 %v475_v15, 264  ;;  %477 = vbcast.lane.b32.xlu0 %v475_v15, 256  ;;  %v574_v51 = vrot.slane %v4606_v47, %v485_v19  ;;  %v1314_v52 = vunpack.c.0.s8 %v1313_v14  ;;  %v585_v54 = vrot.slane %v4606_v47, %v496_v22  ;;  %v596_v31 = vrot.slane %v4606_v47, %v507_v32 }
  0xbf   : > { %v607_v7 = vrot.slane %v4606_v47, %v518_v23  ;;  %v552_v9 = vrot.slane %v4568_v13, %v551_v35 }
  0xc0   : > { %v4619_v55 = vsub.s32 %v1314_v52, %v4561_v8 }
  0xc2   : > { %492 = vbcast.lane.b32.xlu1 %v486_v25, 264  ;;  %488 = vbcast.lane.b32.xlu0 %v486_v25, 256 }
  0xc6   : > { %503 = vbcast.lane.b32.xlu1 %v497_v30, 264  ;;  %499 = vbcast.lane.b32.xlu0 %v497_v30, 256 }
  0xca   : > { %514 = vbcast.lane.b32.xlu1 %v508_v34, 264  ;;  %510 = vbcast.lane.b32.xlu0 %v508_v34, 256 }
  0xce   : > { %525 = vbcast.lane.b32.xlu1 %v519_v27, 264  ;;  %521 = vbcast.lane.b32.xlu0 %v519_v27, 256 }
  0xd2   : > { %536 = vbcast.lane.b32.xlu1 %v530_v42, 264  ;;  %532 = vbcast.lane.b32.xlu0 %v530_v42, 256 }
  0xd6   : > { %547 = vbcast.lane.b32.xlu1 %v541_v45, 264  ;;  %543 = vbcast.lane.b32.xlu0 %v541_v45, 256 }
  0xda   : > { %569 = vbcast.lane.b32.xlu1 %v563_v49, 264  ;;  %565 = vbcast.lane.b32.xlu0 %v563_v49, 256 }
  0xde   : > { %580 = vbcast.lane.b32.xlu1 %v574_v51, 264  ;;  %576 = vbcast.lane.b32.xlu0 %v574_v51, 256 }
  0xe0   : > { %v4533_v41 = vpop.f32.mrf.mxu0 }
  0xe2   : > { %v4535_v63 = vpop.f32.mrf.mxu0  ;;  %591 = vbcast.lane.b32.xlu1 %v585_v54, 264  ;;  %587 = vbcast.lane.b32.xlu0 %v585_v54, 256  ;;  %v618_v54 = vrot.slane %v4606_v47, %v529_v38 }
  0xe4   : > { %v4537_v1 = vpop.f32.mrf.mxu0 }
  0xe6   : > { %v4539_v2 = vpop.f32.mrf.mxu0  ;;  %602 = vbcast.lane.b32.xlu1 %v596_v31, 264  ;;  %598 = vbcast.lane.b32.xlu0 %v596_v31, 256 }
  0xe8   : > { %v4547_v28 = vpop.f32.mrf.mxu0 }
  0xea   : > { %v4549_v4 = vpop.f32.mrf.mxu0  ;;  %609 = vbcast.lane.b32.xlu1 %v607_v7, 256  ;;  %554 = vbcast.lane.b32.xlu0 %v552_v9, 256 }
  0xec   : > { %v4551_v29 = vpop.f32.mrf.mxu0 }
  0xee   : > { %v4553_v56 = vpop.f32.mrf.mxu0  ;;  %558 = vbcast.lane.b32.xlu1 %v552_v9, 264  ;;  %613 = vbcast.lane.b32.xlu0 %v607_v7, 264 }
  0xf0   : > { %v4555_v62 = vpop.f32.mrf.mxu0 }
  0xf2   : > { %v4557_v5 = vpop.f32.mrf.mxu0  ;;  %624 = vbcast.lane.b32.xlu1 %v618_v54, 264  ;;  %620 = vbcast.lane.b32.xlu0 %v618_v54, 256 }
  0xf4   : > { %v4559_v6 = vpop.f32.mrf.mxu0 }
  0xf6   : > { %v4563_v10 = vpop.f32.mrf.mxu0 }
  0xf8   : > { %v4572_v16 = vpop.f32.mrf.mxu0 }
  0xfa   : > { %v4574_v17 = vpop.f32.mrf.mxu0 }
  0xfc   : > { %v4576_v18 = vpop.f32.mrf.mxu0 }
  0xfe   : > { %v4578_v21 = vpop.f32.mrf.mxu0 }
 0x100   : > { %v4582_v24 = vpop.f32.mrf.mxu0 }
 0x102   : > { %v4587_v33 = vpop.f32.mrf.mxu0 }
 0x104   : > { %v4591_v36 = vpop.f32.mrf.mxu0 }
 0x106   : > { %v4595_v39 = vpop.f32.mrf.mxu0 }
 0x108   : > { %v4601_v44 = vpop.f32.mrf.mxu0 }
 0x10a   : > { %v4608_v48 = vpop.f32.mrf.mxu0 }
 0x10c   : > { %v4612_v20 = vpop.f32.mrf.mxu0 }
 0x10e   : > { %v4615_v53 = vpop.f32.mrf.mxu0 }
 0x110   : > { %v4621_v57 = vpop.f32.mrf.mxu0 }
 0x112   : > { %v1135_v0 = vpop.f32.mrf.mxu0 }
 0x114   : > { %v4632_v30 = vpop.f32.mrf.mxu0 }
 0x116   : > { %v4647_v45 = vpop.f32.mrf.mxu0 }
 0x17a   : > { %v3950_v58 = vpop.f32.mrf.mxu1 }
 0x17b   : > { %v1360_v59 = vcombine.high %v3950_v58, %v3950_v58  ;;  %v1367_v37 = vrot.slane %v3950_v58, %v4619_v55 }
 0x17c   : > { %v1300_v26 = vpop.f32.mrf.mxu1 }
 0x17d   : > { %v1374_v60 = vrot.slane %v1360_v59, %v4619_v55  ;;  %v1311_v61 = vcombine.high %v1300_v26, %v1300_v26  ;;  %v1318_v3 = vrot.slane %v1300_v26, %v4619_v55  ;;  %v1375_v12 = vcombine.high %v1367_v37, %v1367_v37 }
 0x17e   : > { %v1383_v34 = vrot.slane %v1367_v37, %v4619_v55  ;;  %v4667_v37 = vpop.f32.mrf.mxu0 }
 0x17f   : > { %v1390_v15 = vrot.slane %v1374_v60, %v4619_v55  ;;  %v1325_v19 = vrot.slane %v1311_v61, %v4619_v55  ;;  %v1326_v22 = vcombine.high %v1318_v3, %v1318_v3  ;;  %v1376_v25 = vcombine.high %v1374_v60, %v1374_v60 }
 0x180   : > { %v4635_v32 = vrot.slane %v1318_v3, %v4619_v55  ;;  %v1397_v23 = vrot.slane %v1375_v12, %v4619_v55  ;;  %v1405_v14 = vcombine.high %v1383_v34, %v1383_v34  ;;  %v4656_v51 = vrot.slane %v1383_v34, %v4566_v11  ;;  %v1155_v34 = vpop.f32.mrf.mxu0 }
 0x181   : > { %v1460_v13 = vrot.slane %v1390_v15, %v4566_v11  ;;  %v4641_v27 = vrot.slane %v1325_v19, %v4619_v55  ;;  %v4644_v40 = vrot.slane %v1326_v22, %v4619_v55  ;;  %v1404_v42 = vrot.slane %v1376_v25, %v4619_v55 }
 0x182   : > { %v1412_v49 = vrot.slane %v4635_v32, %v4566_v11  ;;  %v1407_v58 = vcombine.high %v1397_v23, %v1397_v23  ;;  %v4664_v59 = vrot.slane %v1397_v23, %v4566_v11  ;;  %v629_v60 = vrot.slane %v4606_v47, %v540_v43  ;;  %v4686_v43 = vld [vmem:[%s5850_s4] sm:$0xff] }
 0x183   : > { %v4653_v50 = vrot.slane %v4644_v40, %v4566_v11  ;;  %v1357_v52 = vcombine.high %v4641_v27, %v4641_v27  ;;  %v1513_v26 = vsub.f32 %v1135_v0, %v1460_v13  ;;  %v1464_v31 = vrot.slane %v1404_v42, %v4566_v11 }
 0x184   : > { %v640_v61 = vrot.slane %v4606_v47, %v551_v35  ;;  %v1327_v3 = vcombine.high %v1325_v19, %v1325_v19  ;;  %v1489_v38 = vsub.f32 %v4535_v63, %v1412_v49  ;;  %v1490_v9 = vsub.f32 %v4533_v41, %v1412_v49  ;;  %635 = vbcast.lane.b32.xlu1 %v629_v60, 264 }
 0x185   : > { %v1491_v0 = vsub.f32 %v4539_v2, %v4653_v50  ;;  %v4678_v7 = vrot.slane %v1405_v14, %v4566_v11  ;;  %v1505_v12 = vsub.f32 %v4587_v33, %v4656_v51  ;;  %v1514_v8 = vsub.f32 %v4621_v57, %v1460_v13  ;;  %v4699_v57 = vld [vmem:[%s5850_s4 + $0x8] sm:$0xff]  ;;  %631 = vbcast.lane.b32.xlu0 %v629_v60, 256 }
 0x186   : > { %v1436_v63 = vrot.slane %v1357_v52, %v4566_v11  ;;  %v4690_v41 = vrot.slane %v1407_v58, %v4566_v11  ;;  %v1506_v2 = vsub.f32 %v4582_v24, %v4656_v51  ;;  %v1507_v47 = vsub.f32 %v4595_v39, %v4664_v59 }
 0x187   : > { %v4702_v35 = vadd.f32 %v4686_v43, %v1513_v26  ;;  %v1516_v19 = vsub.f32 %v4632_v30, %v1464_v31  ;;  %v1524_v22 = vadd.f32 %v4699_v57, %v1490_v9  ;;  %v1406_v25 = vcombine.high %v1390_v15, %v1390_v15 }
 0x188   : > { %v1408_v23 = vcombine.high %v1404_v42, %v1404_v42  ;;  %v4707_v13 = vrot.slane %v1327_v3, %v4619_v55  ;;  %v1356_v49 = vcombine.high %v4635_v32, %v4635_v32  ;;  %v1523_v14 = vadd.f32 %v4686_v43, %v1489_v38  ;;  %646 = vbcast.lane.b32.xlu1 %v640_v61, 264 }
 0x189   : > { %v4713_v52 = vadd.f32 %v4686_v43, %v1491_v0  ;;  %v4716_v54 = vadd.f32 %v4699_v57, %v1514_v8  ;;  %v1502_v30 = vsub.f32 %v4572_v16, %v1436_v63  ;;  %v1556_v58 = vmax.f32 %v1524_v22, 0.0  ;;  %v3945_v8 = vpop.f32.mrf.mxu0  ;;  %642 = vbcast.lane.b32.xlu0 %v640_v61, 256 }
 0x18a   : > { %v1468_v15 = vrot.slane %v1406_v25, %v4566_v11  ;;  %v1515_v42 = vsub.f32 %v4647_v45, %v1464_v31  ;;  %v1472_v26 = vrot.slane %v1408_v23, %v4566_v11  ;;  %v1555_v3 = vmax.f32 %v1523_v14, 0.0  ;;  %v2055_v25 = vld [vmem:[%s5852_s6] sm:$0xff] }
 0x18b   : > { %v1557_v32 = vmax.f32 %v4713_v52, 0.0  ;;  %v1508_v38 = vsub.f32 %v4591_v36, %v4664_v59  ;;  %v1509_v9 = vsub.f32 %v4608_v48, %v4678_v7  ;;  %v5861_v16 = vmax.f32 %v4702_v35, 0.0 }
 0x18c   : > { %v4729_v0 = vadd.f32 %v4699_v57, %v1516_v19  ;;  %v4732_v45 = vrot.slane %v1356_v49, %v4566_v11  ;;  %v1588_v31 = vsel %vm1587_vm13, %v1555_v3, -inf  ;;  %v1589_v22 = vsel %vm1587_vm13, %v1556_v58, -inf  ;;  %3955 = vmatprep.mubr.msk.f32.mxu0 %vm1587_vm13, %v1555_v3 }
 0x18d   : > { %v1501_v60 = vsub.f32 %v4574_v17, %v1436_v63  ;;  %v5858_v23 = vmax.f32 %v4716_v54, 0.0  ;;  %v1359_v19 = vcombine.high %v4707_v13, %v4707_v13  ;;  %v1518_v49 = vsub.f32 %v4667_v37, %v1468_v15  ;;  %3956 = vmatmul.mubr.msk.f32.vlgmr.msra.gmra.mxu0 %vm1587_vm13, %v1556_v58 }
 0x18e   : > { %v1517_v14 = vsub.f32 %v1155_v34, %v1468_v15  ;;  %v4747_v52 = vadd.f32 %v4699_v57, %v1502_v30  ;;  %v4750_v17 = vadd.f32 %v4686_v43, %v1515_v42  ;;  %v1520_v63 = vsub.f32 %v3945_v8, %v1472_v26  ;;  %4004 = vmatpush3.msra.mxu0 %v4544_v46  ;;  %v1165_v34 = vpop.f32.mrf.mxu0 }
 0x18f   : > { %3958 = vmatprep.mubr.msk.f32.mxu0 %vm1587_vm13, %v1557_v32  ;;  %v1358_v3 = vcombine.high %v4644_v40, %v4644_v40  ;;  %v1492_v37 = vsub.f32 %v4537_v1, %v4653_v50  ;;  %v1590_v58 = vmax.f32 %v1588_v31, %v1589_v22  ;;  %4005 = vmatprep.subr.mxu0 %v2055_v25  ;;  %v1696_v30 = vsel %vm1587_vm13, %v5861_v16, -inf }
 0x190   : > { %v5859_v15 = vmax.f32 %v4729_v0, 0.0  ;;  %v1493_v46 = vsub.f32 %v4549_v4, %v4732_v45  ;;  %v1535_v42 = vadd.f32 %v4686_v43, %v1501_v60  ;;  %4006 = vmatpush3.msra.mxu0 %v2055_v25  ;;  %v1697_v1 = vsel %vm1587_vm13, %v5858_v23, -inf }
 0x191   : > { %v1440_v40 = vrot.slane %v1359_v19, %v4566_v11  ;;  %v4770_v50 = vadd.f32 %v4699_v57, %v1518_v49  ;;  %v4773_v61 = vadd.f32 %v4686_v43, %v1517_v14  ;;  %v5860_v8 = vmax.f32 %v4750_v17, 0.0 }
 0x192   : > { %v4777_v31 = vadd.f32 %v4699_v57, %v1520_v63  ;;  %v1519_v4 = vsub.f32 %v1165_v34, %v1472_v26  ;;  %v1568_v22 = vmax.f32 %v4747_v52, 0.0  ;;  %v4782_v60 = vrot.slane %v4641_v27, %v4566_v11 }
 0x193   : > { %v1591_v25 = vrot.slane %v1590_v58, 4  ;;  %v1567_v19 = vmax.f32 %v1535_v42, 0.0  ;;  %v1526_v49 = vadd.f32 %v4699_v57, %v1492_v37  ;;  %v4785_v23 = vmax.f32 %v1696_v30, %v1697_v1 }
 0x194   : > { %v1706_v14 = vsel %vm1587_vm13, %v5859_v15, -inf  ;;  %v1494_v63 = vsub.f32 %v4547_v28, %v4732_v45  ;;  %v1527_v26 = vadd.f32 %v4686_v43, %v1493_v46  ;;  %v5862_v52 = vmax.f32 %v4770_v50, 0.0 }
 0x195   : > { %v5863_v27 = vmax.f32 %v4773_v61, 0.0  ;;  %3973 = vmatprep.mubr.msk.f32.mxu1 %vm1587_vm13, %v1567_v19  ;;  %v1558_v34 = vmax.f32 %v1526_v49, 0.0  ;;  %v1503_v37 = vsub.f32 %v4578_v21, %v1440_v40  ;;  %v1705_v30 = vsel %vm1587_vm13, %v5860_v8, -inf }
 0x196   : > { %v5864_v42 = vmax.f32 %v4777_v31, 0.0  ;;  %v4802_v1 = vadd.f32 %v4686_v43, %v1519_v4  ;;  %v1597_v28 = vsel %vm1587_vm13, %v1557_v32, -inf  ;;  %3974 = vmatmul.mubr.msk.f32.vlgmr.msra.gmra.mxu1 %vm1587_vm13, %v1568_v22  ;;  %v1592_v45 = vmax.f32 %v1590_v58, %v1591_v25 }
 0x197   : > { %v1598_v46 = vsel %vm1587_vm13, %v1558_v34, -inf  ;;  %3959 = vmatmul.mubr.msk.f32.gmra.mxu0 %vm1587_vm13, %v1558_v34  ;;  %v1559_v49 = vmax.f32 %v1527_v26, 0.0  ;;  %v1537_v21 = vadd.f32 %v4686_v43, %v1503_v37  ;;  %v1510_v15 = vsub.f32 %v4601_v44, %v4678_v7 }
 0x198   : > { %v1424_v4 = vrot.slane %v1358_v3, %v4566_v11  ;;  %v4815_v32 = vrot.slane %v4707_v13, %v4566_v11  ;;  %v1715_v58 = vsel %vm1587_vm13, %v5862_v52, -inf  ;;  %v1714_v25 = vsel %vm1587_vm13, %v5863_v27, -inf }
 0x199   : > { %v1599_v26 = vmax.f32 %v1597_v28, %v1598_v46  ;;  %3961 = vmatprep.mubr.msk.f32.mxu0 %vm1587_vm13, %v1559_v49  ;;  %v1569_v34 = vmax.f32 %v1537_v21, 0.0  ;;  %v1497_v37 = vsub.f32 %v4557_v5, %v4782_v60  ;;  %v1498_v3 = vsub.f32 %v4555_v62, %v4782_v60 }
 0x19a   : > { %v4828_v13 = vmax.f32 %v1705_v30, %v1706_v14  ;;  %v1585_v16 = vmax.f32 %v4802_v1, 0.0  ;;  %v4834_v52 = vsel %vm1587_vm13, %v5864_v42, -inf  ;;  %v1593_v27 = vrot.slane %v1592_v45, 2 }
 0x19b   : > { %v1600_v28 = vrot.slane %v1599_v26, 4  ;;  %3976 = vmatprep.mubr.msk.f32.mxu1 %vm1587_vm13, %v1569_v34  ;;  %v1528_v46 = vadd.f32 %v4699_v57, %v1494_v63  ;;  %v4838_v21 = vmax.f32 %v1714_v25, %v1715_v58  ;;  %v1504_v5 = vsub.f32 %v4576_v18, %v1440_v40 }
 0x19c   : > { %v1495_v62 = vsub.f32 %v4553_v56, %v1424_v4  ;;  %v1539_v60 = vadd.f32 %v4686_v43, %v1505_v12  ;;  %v1643_v14 = vsel %vm1587_vm13, %v1568_v22, -inf  ;;  %v1606_v30 = vsel %vm1587_vm13, %v1559_v49, -inf }
 0x19d   : > { %v1560_v42 = vmax.f32 %v1528_v46, 0.0  ;;  %v1496_v8 = vsub.f32 %v4551_v29, %v1424_v4  ;;  %v1642_v63 = vsel %vm1587_vm13, %v1567_v19, -inf  ;;  %v1601_v58 = vmax.f32 %v1599_v26, %v1600_v28 }
 0x19e   : > { %v1538_v25 = vadd.f32 %v4699_v57, %v1504_v5  ;;  %v1529_v18 = vadd.f32 %v4686_v43, %v1495_v62  ;;  %v4855_v56 = vsel %vm1587_vm13, %v1585_v16, -inf  ;;  %v1594_v33 = vmax.f32 %v1592_v45, %v1593_v27 }
 0x19f   : > { %v1607_v12 = vsel %vm1587_vm13, %v1560_v42, -inf  ;;  %3962 = vmatmul.mubr.msk.f32.gmra.mxu0 %vm1587_vm13, %v1560_v42  ;;  %v1530_v40 = vadd.f32 %v4699_v57, %v1496_v8  ;;  %v1571_v49 = vmax.f32 %v1539_v60, 0.0  ;;  %v1644_v4 = vmax.f32 %v1642_v63, %v1643_v14 }
 0x1a0   : > { %v1608_v29 = vmax.f32 %v1606_v30, %v1607_v12  ;;  %v1570_v22 = vmax.f32 %v1538_v25, 0.0  ;;  %v1561_v19 = vmax.f32 %v1529_v18, 0.0  ;;  %v1540_v28 = vadd.f32 %v4699_v57, %v1506_v2 }
 0x1a1   : > { %v1562_v26 = vmax.f32 %v1530_v40, 0.0  ;;  %v1531_v46 = vadd.f32 %v4686_v43, %v1497_v37  ;;  %v1602_v27 = vrot.slane %v1601_v58, 2  ;;  %v1541_v8 = vadd.f32 %v4686_v43, %v1507_v47 }
 0x1a2   : > { %v1609_v45 = vrot.slane %v1608_v29, 4  ;;  %3977 = vmatmul.mubr.msk.f32.gmra.mxu1 %vm1587_vm13, %v1570_v22  ;;  %v1615_v42 = vsel %vm1587_vm13, %v1561_v19, -inf  ;;  %3964 = vmatprep.mubr.msk.f32.mxu0 %vm1587_vm13, %v1561_v19  ;;  %v1595_v5 = vrot.slane %v1594_v33, 1  ;;  %v1651_v24 = vsel %vm1587_vm13, %v1569_v34, -inf }
 0x1a3   : > { %3979 = vmatprep.mubr.msk.f32.mxu1 %vm1587_vm13, %v1571_v49  ;;  %v1616_v51 = vsel %vm1587_vm13, %v1562_v26, -inf  ;;  %3965 = vmatmul.mubr.msk.f32.gmra.mxu0 %vm1587_vm13, %v1562_v26  ;;  %v1572_v2 = vmax.f32 %v1540_v28, 0.0  ;;  %v1660_v62 = vsel %vm1587_vm13, %v1571_v49, -inf  ;;  %v1563_v14 = vmax.f32 %v1531_v46, 0.0 }
 0x1a4   : > { %v1610_v37 = vmax.f32 %v1608_v29, %v1609_v45  ;;  %v1617_v60 = vmax.f32 %v1615_v42, %v1616_v51  ;;  %v1652_v30 = vsel %vm1587_vm13, %v1570_v22, -inf  ;;  %v1573_v47 = vmax.f32 %v1541_v8, 0.0 }
 0x1a5   : > { %v1661_v39 = vsel %vm1587_vm13, %v1572_v2, -inf  ;;  %v1532_v63 = vadd.f32 %v4699_v57, %v1498_v3  ;;  %v1645_v34 = vrot.slane %v1644_v4, 4  ;;  %v1603_v25 = vmax.f32 %v1601_v58, %v1602_v27  ;;  %3967 = vmatprep.mubr.msk.f32.mxu0 %vm1587_vm13, %v1563_v14 }
 0x1a6   : > { %v1611_v18 = vrot.slane %v1610_v37, 2  ;;  %v1618_v12 = vrot.slane %v1617_v60, 4  ;;  %3980 = vmatmul.mubr.msk.f32.gmra.mxu1 %vm1587_vm13, %v1572_v2  ;;  %v1624_v40 = vsel %vm1587_vm13, %v1563_v14, -inf  ;;  %v1542_v22 = vadd.f32 %v4699_v57, %v1508_v38 }
 0x1a7   : > { %3982 = vmatprep.mubr.msk.f32.mxu1 %vm1587_vm13, %v1573_v47  ;;  %v1564_v29 = vmax.f32 %v1532_v63, 0.0  ;;  %v1499_v3 = vsub.f32 %v4563_v10, %v4815_v32  ;;  %v1653_v58 = vmax.f32 %v1651_v24, %v1652_v30  ;;  %v1662_v49 = vmax.f32 %v1660_v62, %v1661_v39 }
 0x1a8   : > { %v1619_v19 = vmax.f32 %v1617_v60, %v1618_v12  ;;  %v1543_v26 = vadd.f32 %v4686_v43, %v1509_v9  ;;  %v1574_v46 = vmax.f32 %v1542_v22, 0.0  ;;  %v1500_v59 = vsub.f32 %v4559_v6, %v4815_v32 }
 0x1a9   : > { %v1625_v28 = vsel %vm1587_vm13, %v1564_v29, -inf  ;;  %3968 = vmatmul.mubr.msk.f32.gmra.mxu0 %vm1587_vm13, %v1564_v29  ;;  %v1533_v36 = vadd.f32 %v4686_v43, %v1499_v3  ;;  %v1612_v38 = vmax.f32 %v1610_v37, %v1611_v18  ;;  %v1669_v27 = vsel %vm1587_vm13, %v1573_v47, -inf }
 0x1aa   : > { %v1620_v10 = vrot.slane %v1619_v19, 2  ;;  %v1626_v45 = vmax.f32 %v1624_v40, %v1625_v28  ;;  %v1670_v42 = vsel %vm1587_vm13, %v1574_v46, -inf  ;;  %3983 = vmatmul.mubr.msk.f32.gmra.mxu1 %vm1587_vm13, %v1574_v46  ;;  %v1575_v9 = vmax.f32 %v1543_v26, 0.0 }
 0x1ab   : > { %v1565_v48 = vmax.f32 %v1533_v36, 0.0  ;;  %v1534_v8 = vadd.f32 %v4699_v57, %v1500_v59  ;;  %v1596_v24 = vmax.f32 %v1594_v33, %v1595_v5  ;;  %v1604_v51 = vrot.slane %v1603_v25, 1 }
 0x1ac   : > { %v1621_v2 = vmax.f32 %v1619_v19, %v1620_v10  ;;  %v1627_v62 = vrot.slane %v1626_v45, 4  ;;  %v1646_v60 = vmax.f32 %v1644_v4, %v1645_v34  ;;  %v1671_v14 = vmax.f32 %v1669_v27, %v1670_v42  ;;  %3985 = vmatprep.mubr.msk.f32.mxu1 %vm1587_vm13, %v1575_v9 }
 0x1ad   : > { %v1633_v6 = vsel %vm1587_vm13, %v1565_v48, -inf  ;;  %3970 = vmatprep.mubr.msk.f32.mxu0 %vm1587_vm13, %v1565_v48  ;;  %v1566_v32 = vmax.f32 %v1534_v8, 0.0  ;;  %v1654_v37 = vrot.slane %v1653_v58, 4  ;;  %v1663_v30 = vrot.slane %v1662_v49, 4 }
 0x1ae   : > { %v1628_v39 = vmax.f32 %v1626_v45, %v1627_v62  ;;  %v1544_v33 = vadd.f32 %v4699_v57, %v1510_v15  ;;  %v1613_v5 = vrot.slane %v1612_v38, 1  ;;  %v1672_v47 = vrot.slane %v1671_v14, 4 }
 0x1af   : > { %v1634_v4 = vsel %vm1587_vm13, %v1566_v32, -inf  ;;  %3971 = vmatmul.mubr.msk.f32.gmra.mxu0 %vm1587_vm13, %v1566_v32  ;;  %v1511_v63 = vsub.f32 %v4615_v53, %v4690_v41  ;;  %v1605_v34 = vmax.f32 %v1603_v25, %v1604_v51  ;;  %v1622_v18 = vrot.slane %v1621_v2, 1 }
 0x1b0   : > { %v1629_v12 = vrot.slane %v1628_v39, 2  ;;  %v1635_v40 = vmax.f32 %v1633_v6, %v1634_v4  ;;  %v1678_v29 = vsel %vm1587_vm13, %v1575_v9, -inf  ;;  %v1576_v22 = vmax.f32 %v1544_v33, 0.0 }
 0x1b1   : > { %v1545_v44 = vadd.f32 %v4686_v43, %v1511_v63  ;;  %v1647_v7 = vrot.slane %v1646_v60, 2  ;;  %v1673_v3 = vmax.f32 %v1671_v14, %v1672_v47  ;;  %v1655_v26 = vmax.f32 %v1653_v58, %v1654_v37 }
 0x1b2   : > { %v1630_v15 = vmax.f32 %v1628_v39, %v1629_v12  ;;  %v1636_v19 = vrot.slane %v1635_v40, 4  ;;  %v1614_v28 = vmax.f32 %v1612_v38, %v1613_v5  ;;  %v1664_v46 = vmax.f32 %v1662_v49, %v1663_v30  ;;  %3986 = vmatmul.mubr.msk.f32.gmra.mxu1 %vm1587_vm13, %v1576_v22 }
 0x1b3   : > { %v1679_v36 = vsel %vm1587_vm13, %v1576_v22, -inf  ;;  %v1577_v53 = vmax.f32 %v1545_v44, 0.0  ;;  %v1623_v25 = vmax.f32 %v1621_v2, %v1622_v18  ;;  %v1656_v27 = vrot.slane %v1655_v26, 2 }
 0x1b4   : > { %v1637_v59 = vmax.f32 %v1635_v40, %v1636_v19  ;;  %v1680_v10 = vmax.f32 %v1678_v29, %v1679_v36  ;;  %v1725_v45 = vmax.f32 %v4855_v56, %v4834_v52  ;;  %v1631_v43 = vrot.slane %v1630_v15, 1 }
 0x1b5   : > { %3988 = vmatprep.mubr.msk.f32.mxu1 %vm1587_vm13, %v1577_v53  ;;  %v1648_v42 = vmax.f32 %v1646_v60, %v1647_v7  ;;  %v2073_v58 = vsel %vm1192_vm4, %v1605_v34, %v1596_v24  ;;  %v1674_v38 = vrot.slane %v1673_v3, 2  ;;  %v1657_v9 = vmax.f32 %v1655_v26, %v1656_v27 }
 0x1b6   : > { %v1638_v49 = vrot.slane %v1637_v59, 2  ;;  %v1681_v48 = vrot.slane %v1680_v10, 4  ;;  %v1708_v8 = vrot.slane %v4828_v13, 4  ;;  %v1717_v51 = vrot.slane %v4838_v21, 4 }
 0x1b7   : > { %v2074_v2 = vsel %vm1195_vm5, %v1614_v28, %v2073_v58  ;;  %v1512_v62 = vsub.f32 %v4612_v20, %v4690_v41  ;;  %v1665_v52 = vrot.slane %v1664_v46, 2  ;;  %v1726_v6 = vrot.slane %v1725_v45, 4 }
 0x1b8   : > { %v1682_v56 = vmax.f32 %v1680_v10, %v1681_v48  ;;  %v1639_v14 = vmax.f32 %v1637_v59, %v1638_v49  ;;  %v2075_v60 = vsel %vm1198_vm6, %v1623_v25, %v2074_v2  ;;  %v1632_v24 = vmax.f32 %v1630_v15, %v1631_v43 }
 0x1b9   : > { %v1649_v32 = vrot.slane %v1648_v42, 1  ;;  %v1546_v37 = vadd.f32 %v4699_v57, %v1512_v62  ;;  %v1675_v30 = vmax.f32 %v1673_v3, %v1674_v38  ;;  %v1658_v5 = vrot.slane %v1657_v9, 1 }
 0x1ba   : > { %v1683_v39 = vrot.slane %v1682_v56, 2  ;;  %v1640_v33 = vrot.slane %v1639_v14, 1  ;;  %v5929_v47 = vrot.slane %v4785_v23, 4  ;;  %v1687_v20 = vsel %vm1587_vm13, %v1577_v53, -inf }
 0x1bb   : > { %v2076_v41 = vsel %vm1201_vm7, %v1632_v24, %v2075_v60  ;;  %v1578_v63 = vmax.f32 %v1546_v37, 0.0  ;;  %v1709_v34 = vmax.f32 %v4828_v13, %v1708_v8  ;;  %v1718_v18 = vmax.f32 %v4838_v21, %v1717_v51 }
 0x1bc   : > { %v1700_v4 = vmax.f32 %v4785_v23, %v5929_v47  ;;  %v1666_v12 = vmax.f32 %v1664_v46, %v1665_v52  ;;  %v1641_v40 = vmax.f32 %v1639_v14, %v1640_v33  ;;  %v1727_v57 = vmax.f32 %v1725_v45, %v1726_v6  ;;  %v2626_v47 = vld [vmem:[%s5854_s8 + $0x28] sm:$0xff] }
 0x1bd   : > { %v1684_v29 = vmax.f32 %v1682_v56, %v1683_v39  ;;  %v1650_v22 = vmax.f32 %v1648_v42, %v1649_v32  ;;  %v1688_v44 = vsel %vm1587_vm13, %v1578_v63, -inf  ;;  %3989 = vmatmul.mubr.msk.f32.gmra.mxu1 %vm1587_vm13, %v1578_v63  ;;  %v1676_v7 = vrot.slane %v1675_v30, 1  ;;  %v2622_v63 = vld [vmem:[%s5854_s8 + $0x8] sm:$0xff] }
 0x1be   : > { %v1659_v23 = vmax.f32 %v1657_v9, %v1658_v5  ;;  %v2077_v15 = vsel %vm1204_vm8, %v1641_v40, %v2076_v41  ;;  %v1689_v3 = vmax.f32 %v1687_v20, %v1688_v44  ;;  %v5930_v19 = vmax.f32 %v4702_v35, 0.0  ;;  %v2624_v20 = vld [vmem:[%s5854_s8 + $0x18] sm:$0xff]  ;;  %v2623_v41 = vld [vmem:[%s5854_s8 + $0x10] sm:$0xff]  ;;  %v2955_v40 = vld [vmem:[%s5855_s9 + $0x28] sm:$0xff] }
 0x1bf   : > { %v1701_v13 = vrot.slane %v1700_v4, 2  ;;  %v2078_v21 = vsel %vm1207_vm9, %v1650_v22, %v2077_v15  ;;  %v1710_v26 = vrot.slane %v1709_v34, 2  ;;  %v1667_v28 = vrot.slane %v1666_v12, 1  ;;  %v5013_v22 = vpop.permute.xlu1 %481  ;;  %v2951_v15 = vld [vmem:[%s5855_s9 + $0x8] sm:$0xff] }
 0x1c0   : > { %3991 = vmatprep.mubr.msk.f32.mxu1 %vm1587_vm13, %v5930_v19  ;;  %v2079_v46 = vsel %vm1210_vm10, %v1659_v23, %v2078_v21  ;;  %v1690_v36 = vrot.slane %v1689_v3, 4  ;;  %v1719_v53 = vrot.slane %v1718_v18, 2  ;;  %v1685_v25 = vrot.slane %v1684_v29, 1  ;;  %v5020_v23 = vpop.permute.xlu0 %477  ;;  %v2950_v19 = vld [vmem:[%s5855_s9] sm:$0xff] }
 0x1c1   : > { %4007 = vmatprep.mubr.msk.f32.mxu0 %vm1587_vm13, %v2079_v46  ;;  %v5931_v59 = vmax.f32 %v4716_v54, 0.0  ;;  %v1728_v10 = vrot.slane %v1727_v57, 2  ;;  %v1677_v35 = vmax.f32 %v1675_v30, %v1676_v7  ;;  %v5932_v45 = vmax.f32 %v4750_v17, 0.0  ;;  %v2952_v7 = vld [vmem:[%s5855_s9 + $0x10] sm:$0xff] }
 0x1c2   : > { %v1691_v27 = vmax.f32 %v1689_v3, %v1690_v36  ;;  %v1702_v43 = vmax.f32 %v1700_v4, %v1701_v13  ;;  %v1711_v42 = vmax.f32 %v1709_v34, %v1710_v26  ;;  %v1668_v58 = vmax.f32 %v1666_v12, %v1667_v28  ;;  %v2625_v4 = vld [vmem:[%s5854_s8 + $0x20] sm:$0xff]  ;;  %v2956_v12 = vld [vmem:[%s5855_s9 + $0x30] sm:$0xff] }
 0x1c3   : > { %3992 = vmatmul.mubr.msk.f32.gmra.mxu1 %vm1587_vm13, %v5931_v59  ;;  %v1720_v49 = vmax.f32 %v1718_v18, %v1719_v53  ;;  %v1686_v48 = vmax.f32 %v1684_v29, %v1685_v25  ;;  %v5933_v9 = vmax.f32 %v4729_v0, 0.0  ;;  %v1729_v54 = vmax.f32 %v1727_v57, %v1728_v10  ;;  %v2621_v34 = vld [vmem:[%s5854_s8] sm:$0xff]  ;;  %v2957_v18 = vld [vmem:[%s5855_s9 + $0x38] sm:$0xff]  ;;  %v5030_v13 = vpop.permute.xlu1 %492 }
 0x1c4   : > { %3994 = vmatprep.mubr.msk.f32.mxu1 %vm1587_vm13, %v5932_v45  ;;  %v1692_v38 = vrot.slane %v1691_v27, 2  ;;  %v2080_v8 = vsel %vm1192_vm4, %v1677_v35, %v1668_v58  ;;  %v5934_v2 = vmax.f32 %v4773_v61, 0.0  ;;  %v1703_v17 = vrot.slane %v1702_v43, 1  ;;  %4074 = vmatprep.subr.mxu0 %v2957_v18  ;;  %v2954_v57 = vld [vmem:[%s5855_s9 + $0x20] sm:$0xff]  ;;  %v2953_v29 = vld [vmem:[%s5855_s9 + $0x18] sm:$0xff]  ;;  %v5032_v21 = vpop.permute.xlu0 %488 }
 0x1c5   : > { %v1712_v62 = vrot.slane %v1711_v42, 1  ;;  %v1721_v56 = vrot.slane %v1720_v49, 1  ;;  %v2081_v14 = vsel %vm1195_vm5, %v1686_v48, %v2080_v8  ;;  %v5935_v60 = vmax.f32 %v4770_v50, 0.0  ;;  %v2628_v50 = vld [vmem:[%s5854_s8 + $0x38] sm:$0xff] }
 0x1c6   : > { %v1693_v51 = vmax.f32 %v1691_v27, %v1692_v38  ;;  %v1730_v0 = vrot.slane %v1729_v54, 1  ;;  %v1704_v24 = vmax.f32 %v1702_v43, %v1703_v17  ;;  %v5936_v39 = vmax.f32 %v4777_v31, 0.0  ;;  %4010 = vmatprep.subr.mxu1 %v2628_v50  ;;  %v2627_v31 = vld [vmem:[%s5854_s8 + $0x30] sm:$0xff] }
 0x1c7   : > { %3995 = vmatmul.mubr.msk.f32.gmra.mxu1 %vm1587_vm13, %v5933_v9  ;;  %v1713_v61 = vmax.f32 %v1711_v42, %v1712_v62  ;;  %v1722_v37 = vmax.f32 %v1720_v49, %v1721_v56  ;;  %v5036_v28 = vpop.permute.xlu1 %503 }
 0x1c8   : > { %3997 = vmatprep.mubr.msk.f32.mxu1 %vm1587_vm13, %v5934_v2  ;;  %v1694_v52 = vrot.slane %v1693_v51, 1  ;;  %v1731_v33 = vmax.f32 %v1729_v54, %v1730_v0  ;;  %4011 = vmatpush3.msra.mxu1 %v2628_v50  ;;  %v5040_v36 = vpop.permute.xlu0 %499 }
 0x1c9   : > { %4012 = vmatprep.subr.mxu1 %v2627_v31 }
 0x1ca   : > { %v1695_v6 = vmax.f32 %v1693_v51, %v1694_v52  ;;  %4013 = vmatpush3.msra.mxu1 %v2627_v31 }
 0x1cb   : > { %3998 = vmatmul.mubr.msk.f32.gmra.mxu1 %vm1587_vm13, %v5935_v60  ;;  %4014 = vmatprep.subr.mxu1 %v2626_v47  ;;  %v5046_v59 = vpop.permute.xlu1 %514 }
 0x1cc   : > { %4000 = vmatprep.mubr.msk.f32.mxu1 %vm1587_vm13, %v1585_v16  ;;  %v2082_v32 = vsel %vm1198_vm6, %v1695_v6, %v2081_v14  ;;  %4015 = vmatpush3.msra.mxu1 %v2626_v47  ;;  %5937 = vst [vmem:[#allocation5_spill] sm:$0xff] %v5046_v59  ;;  %v5050_v35 = vpop.permute.xlu0 %510 }
 0x1cd   : > { %v2083_v30 = vsel %vm1201_vm7, %v1704_v24, %v2082_v32  ;;  %4016 = vmatprep.subr.mxu1 %v2625_v4 }
 0x1ce   : > { %v2084_v1 = vsel %vm1204_vm8, %v1713_v61, %v2083_v30  ;;  %4017 = vmatpush3.msra.mxu1 %v2625_v4 }
 0x1cf   : > { %4001 = vmatmul.mubr.msk.f32.gmra.mxu1 %vm1587_vm13, %v5936_v39  ;;  %v2085_v16 = vsel %vm1207_vm9, %v1722_v37, %v2084_v1  ;;  %4018 = vmatprep.subr.mxu1 %v2624_v20  ;;  %v5056_v43 = vpop.permute.xlu1 %525 }
 0x1d0   : > { %v2086_v5 = vsel %vm1210_vm10, %v1731_v33, %v2085_v16  ;;  %4019 = vmatpush3.msra.mxu1 %v2624_v20  ;;  %5938 = vst [vmem:[#allocation6_spill] sm:$0xff] %v5056_v43  ;;  %v5060_v58 = vpop.permute.xlu0 %521 }
 0x1d1   : > { %4008 = vmatmul.mubr.msk.f32.vlgmr.msra.gmra.mxu0 %vm1587_vm13, %v2086_v5  ;;  %4020 = vmatprep.subr.mxu1 %v2623_v41  ;;  %5939 = vst [vmem:[#allocation7_spill] sm:$0xff] %v5060_v58 }
 0x1d2   : > { %4021 = vmatpush3.msra.mxu1 %v2623_v41  ;;  %4075 = vmatpush3.msra.mxu0 %v2957_v18 }
 0x1d3   : > { %4022 = vmatprep.subr.mxu1 %v2622_v63  ;;  %4076 = vmatprep.subr.mxu0 %v2956_v12  ;;  %v5066_v48 = vpop.permute.xlu1 %536 }
 0x1d4   : > { %4023 = vmatpush3.msra.mxu1 %v2622_v63  ;;  %4077 = vmatpush3.msra.mxu0 %v2956_v12  ;;  %5940 = vst [vmem:[#allocation8_spill] sm:$0xff] %v5066_v48  ;;  %v5068_v54 = vpop.permute.xlu0 %532 }
 0x1d5   : > { %4024 = vmatprep.subr.mxu1 %v2621_v34  ;;  %4078 = vmatprep.subr.mxu0 %v2955_v40  ;;  %5941 = vst [vmem:[#allocation9_spill] sm:$0xff] %v5068_v54 }
 0x1d6   : > { %4025 = vmatpush3.msra.mxu1 %v2621_v34  ;;  %4079 = vmatpush3.msra.mxu0 %v2955_v40 }
 0x1d7   : > { %4080 = vmatprep.subr.mxu0 %v2954_v57  ;;  %v5072_v2 = vpop.permute.xlu1 %547 }
 0x1d8   : > { %4081 = vmatpush3.msra.mxu0 %v2954_v57  ;;  %v5076_v62 = vpop.permute.xlu0 %543 }
 0x1d9   : > { %4082 = vmatprep.subr.mxu0 %v2953_v29  ;;  %5942 = vst [vmem:[#allocation10_spill] sm:$0xff] %v5076_v62  ;;  %v5117_v62 = vld [vmem:[%s5853_s7] sm:$0xff] }
 0x1da   : > { %4083 = vmatpush3.msra.mxu0 %v2953_v29 }
 0x1db   : > { %4084 = vmatprep.subr.mxu0 %v2952_v7  ;;  %v5080_v14 = vpop.permute.xlu1 %569 }
 0x1dc   : > { %4085 = vmatpush3.msra.mxu0 %v2952_v7  ;;  %5943 = vst [vmem:[#allocation11_spill] sm:$0xff] %v5080_v14  ;;  %v5082_v0 = vpop.permute.xlu0 %565 }
 0x1dd   : > { %4086 = vmatprep.subr.mxu0 %v2951_v15  ;;  %5944 = vst [vmem:[#allocation12_spill] sm:$0xff] %v5082_v0 }
 0x1de   : > { %4087 = vmatpush3.msra.mxu0 %v2951_v15 }
 0x1df   : > { %4088 = vmatprep.subr.mxu0 %v2950_v19  ;;  %v5086_v61 = vpop.permute.xlu1 %580 }
 0x1e0   : > { %4089 = vmatpush3.msra.mxu0 %v2950_v19  ;;  %5945 = vst [vmem:[#allocation13_spill] sm:$0xff] %v5086_v61  ;;  %v5088_v37 = vpop.permute.xlu0 %576 }
 0x1e1   : > { %5946 = vst [vmem:[#allocation14_spill] sm:$0xff] %v5088_v37 }
 0x1e3   : > { %v5093_v47 = vpop.permute.xlu1 %591 }
 0x1e4   : > { %5947 = vst [vmem:[#allocation15_spill] sm:$0xff] %v5093_v47  ;;  %v5104_v57 = vpop.permute.xlu0 %587 }
 0x1e5   : > { %5948 = vst [vmem:[#allocation16_spill] sm:$0xff] %v5104_v57 }
 0x24d   : > { %v5015_v44 = vpop.f32.mrf.mxu0 }
 0x24f   : > { %v5025_v3 = vpop.f32.mrf.mxu0 }
 0x256   : > { %v5042_v53 = vpop.f32.mrf.mxu1 }
 0x257   : > { %v5034_v26 = vpop.f32.mrf.mxu0 }
 0x258   : > { %v5048_v10 = vpop.f32.mrf.mxu1 }
 0x259   : > { %v5038_v46 = vpop.f32.mrf.mxu0 }
 0x25f   : > { %v5044_v25 = vpop.f32.mrf.mxu0 }
 0x261   : > { %v5052_v27 = vpop.f32.mrf.mxu0 }
 0x262   : > { %v5054_v45 = vpop.f32.mrf.mxu1 }
 0x263   : > { %v5058_v42 = vpop.f32.mrf.mxu0 }
 0x264   : > { %v5062_v38 = vpop.f32.mrf.mxu1 }
 0x265   : > { %v5064_v49 = vpop.f32.mrf.mxu0 }
 0x266   : > { %v3981_v9 = vpop.f32.mrf.mxu1 }
 0x268   : > { %v1976_v51 = vpop.f32.mrf.mxu1 }
 0x269   : > { %v5070_v8 = vpop.f32.mrf.mxu0 }
 0x26a   : > { %v3984_v52 = vpop.f32.mrf.mxu1 }
 0x26b   : > { %v5074_v17 = vpop.f32.mrf.mxu0 }
 0x26c   : > { %v1986_v60 = vpop.f32.mrf.mxu1 }
 0x26f   : > { %v5078_v56 = vpop.f32.mrf.mxu0 }
 0x271   : > { %v5084_v6 = vpop.f32.mrf.mxu0 }
 0x272   : > { %v3987_v24 = vpop.f32.mrf.mxu1 }
 0x274   : > { %v1996_v30 = vpop.f32.mrf.mxu1 }
 0x27d   : > { %v3990_v4 = vpop.f32.mrf.mxu1 }
 0x291   : > { %v4009_v32 = vpop.f32.mrf.mxu0 }
 0x292   : > { %v2224_v39 = vrot.slane %v4009_v32, %v4619_v55  ;;  %v2217_v50 = vcombine.high %v4009_v32, %v4009_v32 }
 0x293   : > { %v2157_v33 = vpop.f32.mrf.mxu0 }
 0x294   : > { %v2232_v1 = vcombine.high %v2224_v39, %v2224_v39  ;;  %v2240_v16 = vrot.slane %v2224_v39, %v4619_v55  ;;  %v2168_v5 = vcombine.high %v2157_v33, %v2157_v33  ;;  %v2175_v31 = vrot.slane %v2157_v33, %v4619_v55 }
 0x295   : > { %v5098_v34 = vrot.slane %v2217_v50, %v4619_v55 }
 0x296   : > { %v2254_v20 = vrot.slane %v2232_v1, %v4619_v55  ;;  %v2262_v41 = vcombine.high %v2240_v16, %v2240_v16  ;;  %v2301_v63 = vrot.slane %v2240_v16, %v4566_v11  ;;  %v2182_v18 = vrot.slane %v2168_v5, %v4619_v55 }
 0x297   : > { %v2183_v12 = vcombine.high %v2175_v31, %v2175_v31  ;;  %v5102_v40 = vrot.slane %v2175_v31, %v4619_v55 }
 0x298   : > { %v2305_v29 = vrot.slane %v2254_v20, %v4566_v11  ;;  %v2309_v7 = vrot.slane %v2262_v41, %v4566_v11  ;;  %v2362_v15 = vadd.f32 %v2301_v63, %v1976_v51  ;;  %v2363_v19 = vadd.f32 %v3981_v9, %v2301_v63  ;;  %v5122_v9 = vld [vmem:[%s5853_s7 + $0x8] sm:$0xff]  ;;  %v2006_v51 = vpop.f32.mrf.mxu1 }
 0x299   : > { %v2264_v32 = vcombine.high %v2254_v20, %v2254_v20  ;;  %v2184_v39 = vcombine.high %v2182_v18, %v2182_v18  ;;  %v5109_v33 = vrot.slane %v2182_v18, %v4619_v55  ;;  %v5112_v50 = vrot.slane %v2183_v12, %v4619_v55 }
 0x29a   : > { %v2364_v1 = vadd.f32 %v2305_v29, %v1986_v60  ;;  %v2365_v16 = vadd.f32 %v3984_v52, %v2305_v29  ;;  %v2366_v5 = vadd.f32 %v2309_v7, %v1996_v30  ;;  %v2367_v31 = vadd.f32 %v3987_v24, %v2309_v7  ;;  %v5130_v24 = vpop.permute.xlu1 %602 }
 0x29b   : > { %v2394_v20 = vmul.f32 %v2362_v15, %v5082_v0  ;;  %v2395_v41 = vmul.f32 %v2363_v19, %v5080_v14  ;;  %v2313_v60 = vrot.slane %v2264_v32, %v4566_v11  ;;  %v5128_v52 = vrot.slane %v2184_v39, %v4619_v55  ;;  %5949 = vst [vmem:[#allocation17_spill] sm:$0xff] %v5130_v24  ;;  %v5142_v32 = vpop.permute.xlu0 %598 }
 0x29c   : > { %v2396_v30 = vmul.f32 %v2364_v1, %v5088_v37  ;;  %v2397_v63 = vmul.f32 %v2365_v16, %v5086_v61  ;;  %v2398_v18 = vmul.f32 %v2366_v5, %v5104_v57  ;;  %v2399_v12 = vmul.f32 %v2367_v31, %v5093_v47  ;;  %5952 = vst [vmem:[#allocation20_spill] sm:$0xff] %v5142_v32  ;;  %v5156_v31 = vpop.f32.mrf.mxu1 }
 0x29d   : > { %v5137_v29 = vadd.f32 %v5117_v62, %v2394_v20  ;;  %v5140_v7 = vadd.f32 %v5122_v9, %v2395_v41  ;;  %v2368_v15 = vadd.f32 %v2313_v60, %v2006_v51  ;;  %v2369_v19 = vadd.f32 %v3990_v4, %v2313_v60 }
 0x29e   : > { %v5145_v39 = vadd.f32 %v5117_v62, %v2396_v30  ;;  %v5148_v1 = vadd.f32 %v5122_v9, %v2397_v63  ;;  %v5151_v16 = vadd.f32 %v5117_v62, %v2398_v18  ;;  %v5154_v5 = vadd.f32 %v5122_v9, %v2399_v12  ;;  %v5178_v60 = vpop.permute.xlu1 %609 }
 0x29f   : > { %5950 = vst [vmem:[#allocation18_spill] sm:$0xff] %v5137_v29  ;;  %5951 = vst [vmem:[#allocation19_spill] sm:$0xff] %v5140_v7  ;;  %v5870_v20 = vmax.f32 %v5137_v29, 0.0  ;;  %v5873_v4 = vmax.f32 %v5140_v7, 0.0  ;;  %v2400_v51 = vmul.f32 %v2368_v15, %v5142_v32  ;;  %v2401_v41 = vmul.f32 %v2369_v19, %v5130_v24 }
 0x2a0   : > { %5953 = vst [vmem:[#allocation21_spill] sm:$0xff] %v5145_v39  ;;  %5954 = vst [vmem:[#allocation22_spill] sm:$0xff] %v5148_v1  ;;  %v5960_v63 = vmax.f32 %v5145_v39, 0.0  ;;  %v5961_v32 = vmax.f32 %v5148_v1, 0.0  ;;  %v5962_v24 = vmax.f32 %v5151_v16, 0.0  ;;  %v2285_v54 = vrot.slane %v5109_v33, %v4566_v11 }
 0x2a1   : > { %5955 = vst [vmem:[#allocation23_spill] sm:$0xff] %v5151_v16  ;;  %5956 = vst [vmem:[#allocation24_spill] sm:$0xff] %v5154_v5  ;;  %v2549_v12 = vsel %vm2476_vm14, %v5870_v20, -inf  ;;  %v2550_v57 = vsel %vm2476_vm14, %v5873_v4, -inf  ;;  %v5173_v15 = vadd.f32 %v5117_v62, %v2400_v51  ;;  %v5176_v19 = vadd.f32 %v5122_v9, %v2401_v41  ;;  %v5189_v51 = vpop.f32.mrf.mxu1 }
 0x2a2   : > { %5959 = vst [vmem:[#allocation27_spill] sm:$0xff] %v5178_v60  ;;  %v2551_v30 = vmax.f32 %v2549_v12, %v2550_v57  ;;  %v2558_v18 = vsel %vm2476_vm14, %v5960_v63, -inf  ;;  %v2559_v20 = vsel %vm2476_vm14, %v5961_v32, -inf  ;;  %v2567_v4 = vsel %vm2476_vm14, %v5962_v24, -inf  ;;  %v5220_v1 = vpop.permute.xlu1 %558 }
 0x2a3   : > { %5957 = vst [vmem:[#allocation25_spill] sm:$0xff] %v5173_v15  ;;  %5958 = vst [vmem:[#allocation26_spill] sm:$0xff] %v5176_v19  ;;  %v2560_v47 = vmax.f32 %v2558_v18, %v2559_v20  ;;  %v5963_v41 = vmax.f32 %v5154_v5, 0.0  ;;  %v5887_v57 = vmax.f32 %v5173_v15, 0.0  ;;  %v5888_v12 = vmax.f32 %v5176_v19, 0.0  ;;  %v5210_v16 = vpop.f32.mrf.mxu1 }
 0x2a4   : > { %v2552_v63 = vrot.slane %v2551_v30, 4  ;;  %v2213_v32 = vcombine.high %v5102_v40, %v5102_v40  ;;  %v2215_v18 = vcombine.high %v5112_v50, %v5112_v50  ;;  %v5218_v19 = vrot.slane %v5098_v34, %v4619_v55 }
 0x2a5   : > { %v2568_v37 = vsel %vm2476_vm14, %v5963_v41, -inf  ;;  %v2561_v0 = vrot.slane %v2560_v47, 4  ;;  %v2576_v24 = vsel %vm2476_vm14, %v5887_v57, -inf  ;;  %v2577_v20 = vsel %vm2476_vm14, %v5888_v12, -inf  ;;  %v5206_v41 = vpop.permute.xlu0 %554  ;;  %v2026_v43 = vpop.f32.mrf.mxu1 }
 0x2a6   : > { %v2569_v61 = vmax.f32 %v2567_v4, %v2568_v37  ;;  %5964 = vst [vmem:[#allocation28_spill] sm:$0xff] %v5206_v41  ;;  %v2233_v37 = vcombine.high %v5098_v34, %v5098_v34  ;;  %v2553_v4 = vmax.f32 %v2551_v30, %v2552_v63  ;;  %v2578_v5 = vmax.f32 %v2576_v24, %v2577_v20 }
 0x2a7   : > { %v2562_v15 = vmax.f32 %v2560_v47, %v2561_v0  ;;  %v2214_v57 = vcombine.high %v5109_v33, %v5109_v33  ;;  %v2216_v12 = vcombine.high %v5128_v52, %v5128_v52  ;;  %v2269_v63 = vrot.slane %v5102_v40, %v4566_v11 }
 0x2a8   : > { %v2570_v14 = vrot.slane %v2569_v61, 4  ;;  %v2554_v39 = vrot.slane %v2553_v4, 2  ;;  %v2579_v30 = vrot.slane %v2578_v5, 4  ;;  %v2273_v0 = vrot.slane %v5112_v50, %v4566_v11 }
 0x2a9   : > { %v2563_v24 = vrot.slane %v2562_v15, 2  ;;  %v2277_v47 = vrot.slane %v2213_v32, %v4566_v11  ;;  %v2281_v20 = vrot.slane %v2215_v18, %v4566_v11  ;;  %v2293_v40 = vrot.slane %v2214_v57, %v4566_v11  ;;  %v5234_v50 = vpop.permute.xlu0 %613 }
 0x2aa   : > { %v2571_v7 = vmax.f32 %v2569_v61, %v2570_v14  ;;  %v2555_v29 = vmax.f32 %v2553_v4, %v2554_v39  ;;  %v2580_v34 = vmax.f32 %v2578_v5, %v2579_v30  ;;  %v2289_v61 = vrot.slane %v5128_v52, %v4566_v11  ;;  %5965 = vst [vmem:[#allocation29_spill] sm:$0xff] %v5234_v50  ;;  %v5244_v52 = vpop.permute.xlu1 %624 }
 0x2ab   : > { %v2564_v14 = vmax.f32 %v2562_v15, %v2563_v24  ;;  %v2297_v58 = vrot.slane %v2216_v12, %v4566_v11  ;;  %v2346_v5 = vadd.f32 %v2269_v63, %v5025_v3  ;;  %v2347_v33 = vadd.f32 %v5015_v44, %v2269_v63  ;;  %5966 = vst [vmem:[#allocation30_spill] sm:$0xff] %v5244_v52  ;;  %v3999_v3 = vpop.f32.mrf.mxu1 }
 0x2ac   : > { %v2572_v48 = vrot.slane %v2571_v7, 2  ;;  %v2556_v32 = vrot.slane %v2555_v29, 1  ;;  %v2581_v39 = vrot.slane %v2580_v34, 2  ;;  %v2348_v15 = vadd.f32 %v2273_v0, %v5038_v46 }
 0x2ad   : > { %v2565_v18 = vrot.slane %v2564_v14, 1  ;;  %v5242_v4 = vadd.f32 %v5034_v26, %v2273_v0  ;;  %v5247_v12 = vadd.f32 %v2277_v47, %v5052_v27  ;;  %v5261_v46 = vadd.f32 %v5058_v42, %v2281_v20 }
 0x2ae   : > { %v5236_v59 = vmax.f32 %v2571_v7, %v2572_v48  ;;  %v2582_v57 = vmax.f32 %v2580_v34, %v2581_v39  ;;  %v5250_v48 = vadd.f32 %v5044_v25, %v2277_v47  ;;  %v5253_v7 = vadd.f32 %v2281_v20, %v5064_v49  ;;  %v5280_v47 = vpop.permute.xlu0 %620 }
 0x2af   : > { %v5255_v30 = vmax.f32 %v2555_v29, %v2556_v32  ;;  %v5257_v44 = vmax.f32 %v2564_v14, %v2565_v18  ;;  %v5264_v27 = vadd.f32 %v2285_v54, %v5074_v17  ;;  %v5267_v25 = vadd.f32 %v5070_v8, %v2285_v54  ;;  %5967 = vst [vmem:[#allocation31_spill] sm:$0xff] %v5280_v47  ;;  %v5299_v14 = vpop.permute.xlu1 %635 }
 0x2b0   : > { %v2583_v63 = vrot.slane %v2582_v57, 1  ;;  %v5270_v49 = vadd.f32 %v2289_v61, %v5084_v6  ;;  %v5273_v29 = vadd.f32 %v5078_v56, %v2289_v61  ;;  %v5276_v24 = vadd.f32 %v2293_v40, %v5048_v10  ;;  %v2036_v6 = vpop.f32.mrf.mxu1  ;;  %5968 = vst [vmem:[#allocation32_spill] sm:$0xff] %v5299_v14 }
 0x2b1   : > { %v2378_v0 = vmul.f32 %v2346_v5, %v5020_v23  ;;  %v2379_v42 = vmul.f32 %v2347_v33, %v5013_v22  ;;  %v5283_v17 = vadd.f32 %v5042_v53, %v2293_v40  ;;  %v5286_v54 = vadd.f32 %v2297_v58, %v5062_v38 }
 0x2b2   : > { %v2317_v8 = vrot.slane %v5218_v19, %v4566_v11  ;;  %v2261_v56 = vrot.slane %v2233_v37, %v4619_v55  ;;  %v5291_v10 = vmax.f32 %v2582_v57, %v2583_v63  ;;  %v5294_v20 = vadd.f32 %v5054_v45, %v2297_v58 }
 0x2b3   : > { %v2413_v34 = vadd.f32 %v5122_v9, %v2379_v42  ;;  %v2263_v53 = vcombine.high %v5218_v19, %v5218_v19  ;;  %v2412_v45 = vadd.f32 %v5117_v62, %v2378_v0  ;;  %v2380_v58 = vmul.f32 %v2348_v15, %v5032_v21 }
 0x2b4   : > { %v2371_v38 = vadd.f32 %v5156_v31, %v2317_v8  ;;  %v2370_v61 = vadd.f32 %v2317_v8, %v5189_v51  ;;  %v2321_v40 = vrot.slane %v2261_v56, %v4566_v11  ;;  %v2265_v37 = vcombine.high %v2261_v56, %v2261_v56  ;;  %v4002_v31 = vpop.f32.mrf.mxu1  ;;  %v5311_v8 = vpop.permute.xlu0 %631 }
 0x2b5   : > { %v2445_v32 = vmax.f32 %v2413_v34, 0.0  ;;  %v2325_v39 = vrot.slane %v2263_v53, %v4566_v11  ;;  %v2444_v42 = vmax.f32 %v2412_v45, 0.0  ;;  %5969 = vst [vmem:[#allocation33_spill] sm:$0xff] %v5311_v8  ;;  %v5325_v53 = vpop.permute.xlu1 %646 }
 0x2b6   : > { %v2403_v5 = vmul.f32 %v2371_v38, %v5234_v50  ;;  %v2402_v19 = vmul.f32 %v2370_v61, %v5178_v60  ;;  %v2373_v18 = vadd.f32 %v5210_v16, %v2321_v40  ;;  %v2372_v33 = vadd.f32 %v2321_v40, %v2026_v43  ;;  %5970 = vst [vmem:[#allocation34_spill] sm:$0xff] %v5325_v53 }
 0x2b7   : > { %v2375_v57 = vadd.f32 %v3999_v3, %v2325_v39  ;;  %v2374_v51 = vadd.f32 %v2325_v39, %v2036_v6  ;;  %v2329_v63 = vrot.slane %v2265_v37, %v4566_v11  ;;  %v2477_v6 = vsel %vm2476_vm14, %v2444_v42, -inf  ;;  %4026 = vmatprep.mubr.msk.f32.mxu1 %vm2476_vm14, %v2444_v42 }
 0x2b8   : > { %v5314_v56 = vadd.f32 %v5122_v9, %v2403_v5  ;;  %v5317_v15 = vadd.f32 %v5117_v62, %v2402_v19  ;;  %v2405_v0 = vmul.f32 %v2373_v18, %v5244_v52  ;;  %v2404_v34 = vmul.f32 %v2372_v33, %v5280_v47  ;;  %4027 = vmatmul.mubr.msk.f32.vlgmr.msra.gmra.mxu1 %vm2476_vm14, %v2445_v32  ;;  %v2046_v18 = vpop.f32.mrf.mxu1 }
 0x2b9   : > { %v2407_v43 = vmul.f32 %v2375_v57, %v5299_v14  ;;  %v2406_v16 = vmul.f32 %v2374_v51, %v5311_v8  ;;  %v2377_v3 = vadd.f32 %v4002_v31, %v2329_v63  ;;  %v2478_v19 = vsel %vm2476_vm14, %v2445_v32, -inf }
 0x2ba   : > { %v5899_v38 = vmax.f32 %v5314_v56, 0.0  ;;  %v5900_v61 = vmax.f32 %v5317_v15, 0.0  ;;  %v5330_v40 = vadd.f32 %v5122_v9, %v2405_v0  ;;  %v5333_v37 = vadd.f32 %v5117_v62, %v2404_v34 }
 0x2bb   : > { %v5337_v39 = vadd.f32 %v5122_v9, %v2407_v43  ;;  %v5340_v45 = vadd.f32 %v5117_v62, %v2406_v16  ;;  %v2409_v5 = vmul.f32 %v2377_v3, %v5325_v53  ;;  %v2479_v3 = vmax.f32 %v2477_v6, %v2478_v19 }
 0x2bc   : > { %v2586_v33 = vsel %vm2476_vm14, %v5899_v38, -inf  ;;  %v2585_v31 = vsel %vm2476_vm14, %v5900_v61, -inf  ;;  %v5903_v57 = vmax.f32 %v5330_v40, 0.0  ;;  %v5906_v51 = vmax.f32 %v5333_v37, 0.0  ;;  %v5363_v61 = vpop.permute.xlu0 %642 }
 0x2bd   : > { %v2587_v42 = vmax.f32 %v2585_v31, %v2586_v33  ;;  %v5907_v0 = vmax.f32 %v5337_v39, 0.0  ;;  %v5908_v34 = vmax.f32 %v5340_v45, 0.0  ;;  %v5355_v32 = vadd.f32 %v5122_v9, %v2409_v5  ;;  %5971 = vst [vmem:[#allocation35_spill] sm:$0xff] %v5363_v61 }
 0x2be   : > { %v2595_v43 = vsel %vm2476_vm14, %v5903_v57, -inf  ;;  %v2594_v16 = vsel %vm2476_vm14, %v5906_v51, -inf  ;;  %v2376_v38 = vadd.f32 %v2329_v63, %v2046_v18  ;;  %v2480_v8 = vrot.slane %v2479_v3, 4 }
 0x2bf   : > { %v2588_v33 = vrot.slane %v2587_v42, 4  ;;  %v2596_v31 = vmax.f32 %v2594_v16, %v2595_v43  ;;  %v2604_v26 = vsel %vm2476_vm14, %v5907_v0, -inf  ;;  %v2603_v5 = vsel %vm2476_vm14, %v5908_v34, -inf }
 0x2c0   : > { %v2605_v53 = vmax.f32 %v2603_v5, %v2604_v26  ;;  %v5915_v57 = vmax.f32 %v5355_v32, 0.0  ;;  %v2408_v51 = vmul.f32 %v2376_v38, %v5363_v61  ;;  %v2414_v19 = vadd.f32 %v5117_v62, %v2380_v58 }
 0x2c1   : > { %v2589_v6 = vmax.f32 %v2587_v42, %v2588_v33  ;;  %v2597_v63 = vrot.slane %v2596_v31, 4  ;;  %v2381_v18 = vmul.f32 %v5242_v4, %v5030_v13  ;;  %v2481_v0 = vmax.f32 %v2479_v3, %v2480_v8 }
 0x2c2   : > { %v2606_v43 = vrot.slane %v2605_v53, 4  ;;  %v2613_v16 = vsel %vm2476_vm14, %v5915_v57, -inf  ;;  %v5380_v26 = vadd.f32 %v5117_v62, %v2408_v51  ;;  %v2446_v14 = vmax.f32 %v2414_v19, 0.0 }
 0x2c3   : > { %v2590_v5 = vrot.slane %v2589_v6, 2  ;;  %v2598_v34 = vmax.f32 %v2596_v31, %v2597_v63  ;;  %v2415_v38 = vadd.f32 %v5122_v9, %v2381_v18  ;;  %v2482_v33 = vrot.slane %v2481_v0, 2 }
 0x2c4   : > { %v2607_v42 = vmax.f32 %v2605_v53, %v2606_v43  ;;  %v5916_v58 = vmax.f32 %v5380_v26, 0.0  ;;  %v2382_v4 = vmul.f32 %v5247_v12, %v5040_v36  ;;  %v2486_v57 = vsel %vm2476_vm14, %v2446_v14, -inf  ;;  %4029 = vmatprep.mubr.msk.f32.mxu1 %vm2476_vm14, %v2446_v14 }
 0x2c5   : > { %v2591_v61 = vmax.f32 %v2589_v6, %v2590_v5  ;;  %v2599_v47 = vrot.slane %v2598_v34, 2  ;;  %v2447_v8 = vmax.f32 %v2415_v38, 0.0  ;;  %v2483_v3 = vmax.f32 %v2481_v0, %v2482_v33 }
 0x2c6   : > { %v2608_v51 = vrot.slane %v2607_v42, 2  ;;  %v2612_v31 = vsel %vm2476_vm14, %v5916_v58, -inf  ;;  %v2416_v53 = vadd.f32 %v5117_v62, %v2382_v4  ;;  %v5394_v63 = vmul.f32 %v5283_v17, %v5072_v2 }
 0x2c7   : > { %v2592_v12 = vrot.slane %v2591_v61, 1  ;;  %v2614_v6 = vmax.f32 %v2612_v31, %v2613_v16  ;;  %v2487_v19 = vsel %vm2476_vm14, %v2447_v8, -inf  ;;  %4030 = vmatmul.mubr.msk.f32.gmra.mxu1 %vm2476_vm14, %v2447_v8  ;;  %v2392_v14 = vmul.f32 %v5286_v54, %v5206_v41 }
 0x2c8   : > { %v2484_v0 = vrot.slane %v2483_v3, 1  ;;  %v2488_v18 = vmax.f32 %v2486_v57, %v2487_v19  ;;  %v2448_v43 = vmax.f32 %v2416_v53, 0.0  ;;  %v2393_v5 = vmul.f32 %v5294_v20, %v5220_v1  ;;  %v5972_v53 = vld [vmem:[#allocation5_spill] sm:$0xff] }
 0x2c9   : > { %v5402_v38 = vmax.f32 %v2598_v34, %v2599_v47  ;;  %v2615_v33 = vrot.slane %v2614_v6, 4  ;;  %v2383_v17 = vmul.f32 %v5250_v48, %v5036_v28  ;;  %v5406_v16 = vmax.f32 %v2591_v61, %v2592_v12  ;;  %v5973_v61 = vld [vmem:[#allocation7_spill] sm:$0xff] }
 0x2ca   : > { %v5408_v4 = vmax.f32 %v2607_v42, %v2608_v51  ;;  %v5410_v8 = vmax.f32 %v2483_v3, %v2484_v0  ;;  %v2489_v31 = vrot.slane %v2488_v18, 4  ;;  %4032 = vmatprep.mubr.msk.f32.mxu1 %vm2476_vm14, %v2448_v43  ;;  %v2495_v57 = vsel %vm2476_vm14, %v2448_v43, -inf  ;;  %v5974_v51 = vld [vmem:[#allocation6_spill] sm:$0xff]  ;;  %v5975_v0 = vld [vmem:[#allocation9_spill] sm:$0xff] }
 0x2cb   : > { %v2616_v54 = vmax.f32 %v2614_v6, %v2615_v33  ;;  %v2417_v20 = vadd.f32 %v5122_v9, %v2383_v17  ;;  %v2384_v47 = vmul.f32 %v5253_v7, %v5050_v35  ;;  %v2385_v48 = vmul.f32 %v5261_v46, %v5972_v53 }
 0x2cc   : > { %v2490_v34 = vmax.f32 %v2488_v18, %v2489_v31  ;;  %v2386_v42 = vmul.f32 %v5264_v27, %v5973_v61  ;;  %v2387_v3 = vmul.f32 %v5267_v25, %v5974_v51  ;;  %v2388_v43 = vmul.f32 %v5270_v49, %v5975_v0 }
 0x2cd   : > { %v2617_v12 = vrot.slane %v2616_v54, 2  ;;  %v2449_v19 = vmax.f32 %v2417_v20, 0.0  ;;  %v2418_v6 = vadd.f32 %v5117_v62, %v2384_v47  ;;  %v2419_v7 = vadd.f32 %v5122_v9, %v2385_v48 }
 0x2ce   : > { %v2491_v33 = vrot.slane %v2490_v34, 2  ;;  %v2420_v18 = vadd.f32 %v5117_v62, %v2386_v42  ;;  %v2421_v46 = vadd.f32 %v5122_v9, %v2387_v3  ;;  %v2422_v31 = vadd.f32 %v5117_v62, %v2388_v43  ;;  %v5976_v3 = vld [vmem:[#allocation8_spill] sm:$0xff] }
 0x2cf   : > { %v5429_v17 = vmax.f32 %v2616_v54, %v2617_v12  ;;  %v2496_v27 = vsel %vm2476_vm14, %v2449_v19, -inf  ;;  %4033 = vmatmul.mubr.msk.f32.gmra.mxu1 %vm2476_vm14, %v2449_v19  ;;  %v2450_v25 = vmax.f32 %v2418_v6, 0.0  ;;  %v2451_v58 = vmax.f32 %v2419_v7, 0.0 }
 0x2d0   : > { %v2492_v20 = vmax.f32 %v2490_v34, %v2491_v33  ;;  %v2497_v47 = vmax.f32 %v2495_v57, %v2496_v27  ;;  %v2452_v49 = vmax.f32 %v2420_v18, 0.0  ;;  %v2453_v48 = vmax.f32 %v2421_v46, 0.0  ;;  %v5977_v46 = vld [vmem:[#allocation10_spill] sm:$0xff] }
 0x2d1   : > { %v2504_v52 = vsel %vm2476_vm14, %v2450_v25, -inf  ;;  %4035 = vmatprep.mubr.msk.f32.mxu1 %vm2476_vm14, %v2450_v25  ;;  %v2454_v42 = vmax.f32 %v2422_v31, 0.0  ;;  %v2389_v54 = vmul.f32 %v5273_v29, %v5976_v3  ;;  %v2505_v19 = vsel %vm2476_vm14, %v2451_v58, -inf }
 0x2d2   : > { %v2493_v12 = vrot.slane %v2492_v20, 1  ;;  %v2498_v60 = vrot.slane %v2497_v47, 4  ;;  %v2513_v6 = vsel %vm2476_vm14, %v2452_v49, -inf  ;;  %v2506_v43 = vmax.f32 %v2504_v52, %v2505_v19 }
 0x2d3   : > { %4036 = vmatmul.mubr.msk.f32.gmra.mxu1 %vm2476_vm14, %v2451_v58  ;;  %v2514_v57 = vsel %vm2476_vm14, %v2453_v48, -inf  ;;  %v2522_v34 = vsel %vm2476_vm14, %v2454_v42, -inf  ;;  %v2423_v33 = vadd.f32 %v5122_v9, %v2389_v54  ;;  %v2390_v27 = vmul.f32 %v5276_v24, %v5977_v46 }
 0x2d4   : > { %v2494_v7 = vmax.f32 %v2492_v20, %v2493_v12  ;;  %v2499_v18 = vmax.f32 %v2497_v47, %v2498_v60  ;;  %4038 = vmatprep.mubr.msk.f32.mxu1 %vm2476_vm14, %v2452_v49  ;;  %v2515_v29 = vmax.f32 %v2513_v6, %v2514_v57  ;;  %v2507_v25 = vrot.slane %v2506_v43, 4 }
 0x2d5   : > { %v2455_v31 = vmax.f32 %v2423_v33, 0.0  ;;  %v2425_v52 = vadd.f32 %v5122_v9, %v5394_v63  ;;  %v2426_v58 = vadd.f32 %v5117_v62, %v2392_v14  ;;  %v2424_v41 = vadd.f32 %v5117_v62, %v2390_v27 }
 0x2d6   : > { %v2500_v19 = vrot.slane %v2499_v18, 2  ;;  %v2516_v50 = vrot.slane %v2515_v29, 4  ;;  %v2427_v20 = vadd.f32 %v5122_v9, %v2393_v5  ;;  %v2508_v60 = vmax.f32 %v2506_v43, %v2507_v25 }
 0x2d7   : > { %4039 = vmatmul.mubr.msk.f32.gmra.mxu1 %vm2476_vm14, %v2453_v48  ;;  %v2523_v47 = vsel %vm2476_vm14, %v2455_v31, -inf  ;;  %v2457_v49 = vmax.f32 %v2425_v52, 0.0  ;;  %v2458_v24 = vmax.f32 %v2426_v58, 0.0  ;;  %v2456_v6 = vmax.f32 %v2424_v41, 0.0 }
 0x2d8   : > { %v2501_v54 = vmax.f32 %v2499_v18, %v2500_v19  ;;  %v2517_v12 = vmax.f32 %v2515_v29, %v2516_v50  ;;  %4041 = vmatprep.mubr.msk.f32.mxu1 %vm2476_vm14, %v2454_v42  ;;  %v2524_v63 = vmax.f32 %v2522_v34, %v2523_v47  ;;  %v2509_v14 = vrot.slane %v2508_v60, 2 }
 0x2d9   : > { %v2532_v57 = vsel %vm2476_vm14, %v2457_v49, -inf  ;;  %v2459_v33 = vmax.f32 %v2427_v20, 0.0  ;;  %v2540_v62 = vsel %vm2476_vm14, %v2458_v24, -inf  ;;  %v2531_v48 = vsel %vm2476_vm14, %v2456_v6, -inf }
 0x2da   : > { %v2502_v9 = vrot.slane %v2501_v54, 1  ;;  %v2518_v5 = vrot.slane %v2517_v12, 2  ;;  %v2525_v43 = vrot.slane %v2524_v63, 4  ;;  %v2510_v27 = vmax.f32 %v2508_v60, %v2509_v14 }
 0x2db   : > { %4042 = vmatmul.mubr.msk.f32.gmra.mxu1 %vm2476_vm14, %v2455_v31  ;;  %v2533_v18 = vmax.f32 %v2531_v48, %v2532_v57  ;;  %v2541_v50 = vsel %vm2476_vm14, %v2459_v33, -inf  ;;  %v2974_v41 = vsel %vm1192_vm4, %v2494_v7, %v5410_v8  ;;  %v2601_v52 = vrot.slane %v5402_v38, 1 }
 0x2dc   : > { %v2503_v42 = vmax.f32 %v2501_v54, %v2502_v9  ;;  %v2519_v34 = vmax.f32 %v2517_v12, %v2518_v5  ;;  %v2526_v29 = vmax.f32 %v2524_v63, %v2525_v43  ;;  %4044 = vmatprep.mubr.msk.f32.mxu1 %vm2476_vm14, %v2456_v6  ;;  %v2542_v25 = vmax.f32 %v2540_v62, %v2541_v50 }
 0x2dd   : > { %v2511_v58 = vrot.slane %v2510_v27, 1  ;;  %v2534_v19 = vrot.slane %v2533_v18, 4  ;;  %v5978_v20 = vrot.slane %v5236_v59, 1  ;;  %v2610_v8 = vrot.slane %v5408_v4, 1 }
 0x2de   : > { %v2520_v60 = vrot.slane %v2519_v34, 1  ;;  %v2527_v47 = vrot.slane %v2526_v29, 2  ;;  %v2543_v14 = vrot.slane %v2542_v25, 4  ;;  %v2975_v57 = vsel %vm1195_vm5, %v2503_v42, %v2974_v41 }
 0x2df   : > { %v2575_v31 = vmax.f32 %v5236_v59, %v5978_v20  ;;  %v2512_v7 = vmax.f32 %v2510_v27, %v2511_v58  ;;  %v2535_v54 = vmax.f32 %v2533_v18, %v2534_v19  ;;  %4045 = vmatmul.mubr.msk.f32.gmra.mxu1 %vm2476_vm14, %v2457_v49  ;;  %v2981_v12 = vsel %vm1192_vm4, %v5257_v44, %v5255_v30  ;;  %v5981_v19 = vld [vmem:[#allocation19_spill] sm:$0xff] }
 0x2e0   : > { %v2528_v63 = vmax.f32 %v2526_v29, %v2527_v47  ;;  %v2544_v6 = vmax.f32 %v2542_v25, %v2543_v14  ;;  %4047 = vmatprep.mubr.msk.f32.mxu1 %vm2476_vm14, %v2458_v24  ;;  %v2619_v59 = vrot.slane %v5429_v17, 1  ;;  %v2521_v9 = vmax.f32 %v2519_v34, %v2520_v60  ;;  %v5979_v34 = vld [vmem:[#allocation18_spill] sm:$0xff] }
 0x2e1   : > { %v2982_v62 = vsel %vm1195_vm5, %v2575_v31, %v2981_v12  ;;  %v2536_v5 = vrot.slane %v2535_v54, 2  ;;  %v2976_v43 = vsel %vm1198_vm6, %v2512_v7, %v2975_v57  ;;  %v2602_v44 = vmax.f32 %v5402_v38, %v2601_v52  ;;  %v5983_v31 = vld [vmem:[#allocation21_spill] sm:$0xff]  ;;  %v5985_v57 = vld [vmem:[#allocation22_spill] sm:$0xff]  ;;  %v5987_v7 = vld [vmem:[#allocation23_spill] sm:$0xff] }
 0x2e2   : > { %v2983_v48 = vsel %vm1198_vm6, %v5291_v10, %v2982_v62  ;;  %v2529_v49 = vrot.slane %v2528_v63, 1  ;;  %v2545_v27 = vrot.slane %v2544_v6, 2  ;;  %v2977_v24 = vsel %vm1201_vm7, %v2521_v9, %v2976_v43  ;;  %v5989_v12 = vld [vmem:[#allocation24_spill] sm:$0xff]  ;;  %v5993_v62 = vld [vmem:[#allocation26_spill] sm:$0xff] }
 0x2e3   : > { %v2984_v30 = vsel %vm1201_vm7, %v5406_v16, %v2983_v48  ;;  %v2537_v18 = vmax.f32 %v2535_v54, %v2536_v5  ;;  %4048 = vmatmul.mubr.msk.f32.gmra.mxu1 %vm2476_vm14, %v2459_v33  ;;  %v2611_v42 = vmax.f32 %v5408_v4, %v2610_v8  ;;  %v5980_v29 = vmax.f32 %v5979_v34, 0.0 }
 0x2e4   : > { %v2530_v50 = vmax.f32 %v2528_v63, %v2529_v49  ;;  %v2546_v41 = vmax.f32 %v2544_v6, %v2545_v27  ;;  %v2620_v25 = vmax.f32 %v5429_v17, %v2619_v59  ;;  %v2985_v16 = vsel %vm1204_vm8, %v2602_v44, %v2984_v30  ;;  %v5991_v6 = vld [vmem:[#allocation25_spill] sm:$0xff] }
 0x2e5   : > { %4050 = vmatprep.mubr.msk.f32.mxu1 %vm2476_vm14, %v5980_v29  ;;  %v2538_v10 = vrot.slane %v2537_v18, 1  ;;  %v5982_v20 = vmax.f32 %v5981_v19, 0.0  ;;  %v2986_v4 = vsel %vm1207_vm9, %v2611_v42, %v2985_v16  ;;  %v5984_v60 = vmax.f32 %v5983_v31, 0.0 }
 0x2e6   : > { %v2547_v58 = vrot.slane %v2546_v41, 1  ;;  %v2978_v38 = vsel %vm1204_vm8, %v2530_v50, %v2977_v24  ;;  %v2987_v17 = vsel %vm1210_vm10, %v2620_v25, %v2986_v4  ;;  %v5986_v8 = vmax.f32 %v5985_v57, 0.0 }
 0x2e7   : > { %v2539_v52 = vmax.f32 %v2537_v18, %v2538_v10  ;;  %4051 = vmatmul.mubr.msk.f32.gmra.mxu1 %vm2476_vm14, %v5982_v20  ;;  %v5988_v54 = vmax.f32 %v5987_v7, 0.0  ;;  %v5990_v63 = vmax.f32 %v5989_v12, 0.0  ;;  %v5992_v59 = vmax.f32 %v5991_v6, 0.0 }
 0x2e8   : > { %v2548_v33 = vmax.f32 %v2546_v41, %v2547_v58  ;;  %4053 = vmatprep.mubr.msk.f32.mxu1 %vm2476_vm14, %v5984_v60  ;;  %v5994_v9 = vmax.f32 %v5993_v62, 0.0  ;;  %v5995_v5 = vmax.f32 %v5317_v15, 0.0  ;;  %v5996_v43 = vmax.f32 %v5314_v56, 0.0 }
 0x2e9   : > { %v2979_v47 = vsel %vm1207_vm9, %v2539_v52, %v2978_v38  ;;  %v5997_v48 = vmax.f32 %v5333_v37, 0.0  ;;  %v5998_v49 = vmax.f32 %v5330_v40, 0.0  ;;  %v5999_v27 = vmax.f32 %v5340_v45, 0.0 }
 0x2ea   : > { %v2980_v14 = vsel %vm1210_vm10, %v2548_v33, %v2979_v47  ;;  %v6000_v15 = vmax.f32 %v5337_v39, 0.0  ;;  %v6001_v56 = vmax.f32 %v5380_v26, 0.0  ;;  %v6002_v37 = vmax.f32 %v5355_v32, 0.0 }
 0x2eb   : > { %4090 = vmatprep.mubr.msk.f32.mxu0 %vm2476_vm14, %v2980_v14  ;;  %4054 = vmatmul.mubr.msk.f32.gmra.mxu1 %vm2476_vm14, %v5986_v8 }
 0x2ec   : > { %4091 = vmatmul.mubr.msk.f32.vlgmr.msra.gmra.mxu0 %vm2476_vm14, %v2987_v17  ;;  %4056 = vmatprep.mubr.msk.f32.mxu1 %vm2476_vm14, %v5988_v54 }
 0x2ef   : > { %4057 = vmatmul.mubr.msk.f32.gmra.mxu1 %vm2476_vm14, %v5990_v63 }
 0x2f0   : > { %4059 = vmatprep.mubr.msk.f32.mxu1 %vm2476_vm14, %v5992_v59 }
 0x2f3   : > { %4060 = vmatmul.mubr.msk.f32.gmra.mxu1 %vm2476_vm14, %v5994_v9 }
 0x2f4   : > { %4062 = vmatprep.mubr.msk.f32.mxu1 %vm2476_vm14, %v5995_v5 }
 0x2f7   : > { %4063 = vmatmul.mubr.msk.f32.gmra.mxu1 %vm2476_vm14, %v5996_v43 }
 0x2f8   : > { %4065 = vmatprep.mubr.msk.f32.mxu1 %vm2476_vm14, %v5997_v48 }
 0x2fb   : > { %4066 = vmatmul.mubr.msk.f32.gmra.mxu1 %vm2476_vm14, %v5998_v49 }
 0x2fc   : > { %4068 = vmatprep.mubr.msk.f32.mxu1 %vm2476_vm14, %v5999_v27 }
 0x2ff   : > { %4069 = vmatmul.mubr.msk.f32.gmra.mxu1 %vm2476_vm14, %v6000_v15 }
 0x300   : > { %4071 = vmatprep.mubr.msk.f32.mxu1 %vm2476_vm14, %v6001_v56 }
 0x303   : > { %4072 = vmatmul.mubr.msk.f32.gmra.mxu1 %vm2476_vm14, %v6002_v37 }
 0x378   : > { %v4028_v30 = vpop.f32.mrf.mxu1 }
 0x37a   : > { %v2791_v40 = vpop.f32.mrf.mxu1 }
 0x387   : > { %v4031_v44 = vpop.f32.mrf.mxu1 }
 0x389   : > { %v2801_v18 = vpop.f32.mrf.mxu1 }
 0x38f   : > { %v4034_v24 = vpop.f32.mrf.mxu1 }
 0x391   : > { %v2811_v45 = vpop.f32.mrf.mxu1 }
 0x393   : > { %v4037_v50 = vpop.f32.mrf.mxu1 }
 0x395   : > { %v2821_v41 = vpop.f32.mrf.mxu1 }
 0x397   : > { %v4040_v42 = vpop.f32.mrf.mxu1 }
 0x399   : > { %v2831_v39 = vpop.f32.mrf.mxu1 }
 0x39b   : > { %v5542_v34 = vpop.f32.mrf.mxu1 }
 0x39d   : > { %v5544_v29 = vpop.f32.mrf.mxu1 }
 0x39f   : > { %v4046_v26 = vpop.f32.mrf.mxu1 }
 0x3a1   : > { %v2851_v10 = vpop.f32.mrf.mxu1 }
 0x3a3   : > { %v5548_v32 = vpop.f32.mrf.mxu1 }
 0x3a5   : > { %v5551_v52 = vpop.f32.mrf.mxu1 }
 0x3a7   : > { %v5562_v57 = vpop.f32.mrf.mxu1 }
 0x3a9   : > { %v5576_v37 = vpop.f32.mrf.mxu1 }
 0x3ac   : > { %v5546_v25 = vpop.f32.mrf.mxu0 }
 0x3ad   : > { %v5555_v19 = vrot.slane %v5546_v25, %v4619_v55 }
 0x3ae   : > { %v3058_v16 = vpop.f32.mrf.mxu0 }
 0x3af   : > { %v3069_v58 = vcombine.high %v3058_v16, %v3058_v16  ;;  %v3076_v38 = vrot.slane %v3058_v16, %v4619_v55  ;;  %v5566_v8 = vrot.slane %v5555_v19, %v4619_v55 }
 0x3b1   : > { %v3083_v20 = vrot.slane %v3069_v58, %v4619_v55  ;;  %v3084_v33 = vcombine.high %v3076_v38, %v3076_v38  ;;  %v3092_v4 = vrot.slane %v3076_v38, %v4619_v55 }
 0x3b3   : > { %v3085_v31 = vcombine.high %v3083_v20, %v3083_v20  ;;  %v3099_v60 = vrot.slane %v3083_v20, %v4619_v55  ;;  %v3106_v47 = vrot.slane %v3084_v33, %v4619_v55  ;;  %v3114_v17 = vcombine.high %v3092_v4, %v3092_v4 }
 0x3b4   : > { %v3170_v14 = vrot.slane %v3092_v4, %v4566_v11 }
 0x3b5   : > { %v3115_v7 = vcombine.high %v3099_v60, %v3099_v60  ;;  %v3186_v54 = vrot.slane %v3099_v60, %v4566_v11  ;;  %v5570_v12 = vrot.slane %v3085_v31, %v4619_v55  ;;  %v3116_v63 = vcombine.high %v3106_v47, %v3106_v47 }
 0x3b6   : > { %v3174_v6 = vrot.slane %v3106_v47, %v4566_v11  ;;  %v3178_v59 = vrot.slane %v3114_v17, %v4566_v11  ;;  %v3247_v62 = vadd.f32 %v3170_v14, %v2791_v40  ;;  %v3248_v5 = vadd.f32 %v4028_v30, %v3170_v14 }
 0x3b7   : > { %v3194_v9 = vrot.slane %v3115_v7, %v4566_v11  ;;  %v3255_v43 = vadd.f32 %v3186_v54, %v2831_v39  ;;  %v3256_v48 = vadd.f32 %v4040_v42, %v3186_v54  ;;  %v3182_v49 = vrot.slane %v3116_v63, %v4566_v11  ;;  %v5584_v42 = vld [vmem:[%s5856_s10] ss:$0 sm:$0xff] }
 0x3b8   : > { %v3249_v27 = vadd.f32 %v3174_v6, %v2801_v18  ;;  %v3250_v15 = vadd.f32 %v4031_v44, %v3174_v6  ;;  %v3251_v56 = vadd.f32 %v3178_v59, %v2811_v45  ;;  %v3252_v16 = vadd.f32 %v4034_v24, %v3178_v59 }
 0x3b9   : > { %v3259_v58 = vadd.f32 %v3194_v9, %v2851_v10  ;;  %v3260_v38 = vadd.f32 %v4046_v26, %v3194_v9  ;;  %v3279_v20 = vmul.f32 %v3247_v62, %v5020_v23  ;;  %v3253_v33 = vadd.f32 %v3182_v49, %v2821_v41  ;;  %v5594_v10 = vpop.f32.mrf.mxu1 }
 0x3ba   : > { %v3254_v4 = vadd.f32 %v4037_v50, %v3182_v49  ;;  %v3280_v40 = vmul.f32 %v3248_v5, %v5013_v22  ;;  %v3281_v30 = vmul.f32 %v3249_v27, %v5032_v21  ;;  %v3282_v44 = vmul.f32 %v3250_v15, %v5030_v13 }
 0x3bb   : > { %v3283_v18 = vmul.f32 %v3251_v56, %v5040_v36  ;;  %v3284_v24 = vmul.f32 %v3252_v16, %v5036_v28  ;;  %v3287_v45 = vmul.f32 %v3255_v43, %v5973_v61  ;;  %v3285_v41 = vmul.f32 %v3253_v33, %v5050_v35  ;;  %v5609_v27 = vpop.f32.mrf.mxu1 }
 0x3bc   : > { %v3286_v50 = vmul.f32 %v3254_v4, %v5972_v53  ;;  %v3288_v39 = vmul.f32 %v3256_v48, %v5974_v51  ;;  %v3291_v26 = vmul.f32 %v3259_v58, %v5977_v46  ;;  %v3292_v31 = vmul.f32 %v3260_v38, %v5072_v2 }
 0x3bd   : > { %v3318_v60 = vadd.f32 %v5584_v42, %v3279_v20  ;;  %v3319_v47 = vadd.f32 %v5584_v42, %v3280_v40  ;;  %v3320_v17 = vadd.f32 %v5584_v42, %v3281_v30  ;;  %v3321_v14 = vadd.f32 %v5584_v42, %v3282_v44 }
 0x3be   : > { %v3322_v7 = vadd.f32 %v5584_v42, %v3283_v18  ;;  %v3323_v54 = vadd.f32 %v5584_v42, %v3284_v24  ;;  %v3324_v63 = vadd.f32 %v5584_v42, %v3285_v41  ;;  %v3325_v6 = vadd.f32 %v5584_v42, %v3286_v50 }
 0x3bf   : > { %v3326_v59 = vadd.f32 %v5584_v42, %v3287_v45  ;;  %v3327_v62 = vadd.f32 %v5584_v42, %v3288_v39  ;;  %v3330_v9 = vadd.f32 %v5584_v42, %v3291_v26  ;;  %v3331_v5 = vadd.f32 %v5584_v42, %v3292_v31  ;;  %v5618_v39 = vpop.f32.mrf.mxu1 }
 0x3c0   : > { %v3350_v43 = vmax.f32 %v3318_v60, 0.0  ;;  %v3351_v48 = vmax.f32 %v3319_v47, 0.0  ;;  %v3352_v49 = vmax.f32 %v3320_v17, 0.0  ;;  %v3353_v15 = vmax.f32 %v3321_v14, 0.0 }
 0x3c1   : > { %v3354_v56 = vmax.f32 %v3322_v7, 0.0  ;;  %v3355_v16 = vmax.f32 %v3323_v54, 0.0  ;;  %v3356_v58 = vmax.f32 %v3324_v63, 0.0  ;;  %v3357_v38 = vmax.f32 %v3325_v6, 0.0 }
 0x3c2   : > { %v3358_v20 = vmax.f32 %v3326_v59, 0.0  ;;  %v3359_v33 = vmax.f32 %v3327_v62, 0.0  ;;  %v3362_v4 = vmax.f32 %v3330_v9, 0.0  ;;  %v3363_v40 = vmax.f32 %v3331_v5, 0.0 }
 0x3c3   : > { %v3382_v30 = vmul.f32 %v3350_v43, %v5020_v23  ;;  %v3383_v44 = vmul.f32 %v3351_v48, %v5013_v22  ;;  %v3384_v18 = vmul.f32 %v3352_v49, %v5032_v21  ;;  %v3385_v24 = vmul.f32 %v3353_v15, %v5030_v13 }
 0x3c4   : > { %v3386_v45 = vmul.f32 %v3354_v56, %v5040_v36  ;;  %v3387_v41 = vmul.f32 %v3355_v16, %v5036_v28  ;;  %v3388_v50 = vmul.f32 %v3356_v58, %v5050_v35  ;;  %v3389_v26 = vmul.f32 %v3357_v38, %v5972_v53 }
 0x3c5   : > { %v3390_v31 = vmul.f32 %v3358_v20, %v5973_v61  ;;  %v3391_v23 = vmul.f32 %v3359_v33, %v5974_v51  ;;  %v3394_v22 = vmul.f32 %v3362_v4, %v5977_v46  ;;  %v3395_v21 = vmul.f32 %v3363_v40, %v5072_v2  ;;  %v5629_v51 = vpop.f32.mrf.mxu1 }
 0x3c6   : > { %v3414_v60 = vmax.f32 %v3382_v30, %v3383_v44  ;;  %v3421_v13 = vmax.f32 %v3384_v18, %v3385_v24  ;;  %v3428_v47 = vmax.f32 %v3386_v45, %v3387_v41  ;;  %v3435_v36 = vmax.f32 %v3388_v50, %v3389_v26  ;;  %v6003_v50 = vld [vmem:[#allocation11_spill] sm:$0xff] }
 0x3c7   : > { %v3442_v17 = vmax.f32 %v3390_v31, %v3391_v23  ;;  %v3117_v28 = vcombine.high %v5570_v12, %v5570_v12  ;;  %v3190_v35 = vrot.slane %v5570_v12, %v4566_v11  ;;  %v3456_v7 = vmax.f32 %v3394_v22, %v3395_v21  ;;  %v5641_v49 = vpop.f32.mrf.mxu1 }
 0x3c8   : > { %v3415_v53 = vrot.slane %v3414_v60, 4  ;;  %v3422_v14 = vrot.slane %v3421_v13, 4  ;;  %v3429_v61 = vrot.slane %v3428_v47, 4  ;;  %v3118_v2 = vcombine.high %v5546_v25, %v5546_v25 }
 0x3c9   : > { %v3436_v46 = vrot.slane %v3435_v36, 4  ;;  %v3198_v54 = vrot.slane %v3117_v28, %v4566_v11  ;;  %v3257_v63 = vadd.f32 %v3190_v35, %v5544_v29  ;;  %v3133_v6 = vcombine.high %v5555_v19, %v5555_v19  ;;  %v5655_v44 = vpop.f32.mrf.mxu1 }
 0x3ca   : > { %v3416_v59 = vmax.f32 %v3414_v60, %v3415_v53  ;;  %v3443_v62 = vrot.slane %v3442_v17, 4  ;;  %v3202_v12 = vrot.slane %v5566_v8, %v4566_v11  ;;  %v3423_v9 = vmax.f32 %v3421_v13, %v3422_v14 }
 0x3cb   : > { %v3430_v5 = vmax.f32 %v3428_v47, %v3429_v61  ;;  %v3258_v43 = vadd.f32 %v5542_v34, %v3190_v35  ;;  %v3262_v48 = vadd.f32 %v5548_v32, %v3198_v54  ;;  %v3457_v25 = vrot.slane %v3456_v7, 4  ;;  %v6004_v35 = vld [vmem:[#allocation12_spill] sm:$0xff] }
 0x3cc   : > { %v5644_v15 = vrot.slane %v3118_v2, %v4619_v55  ;;  %v3437_v29 = vmax.f32 %v3435_v36, %v3436_v46  ;;  %v3289_v19 = vmul.f32 %v3257_v63, %v5975_v0  ;;  %v3444_v16 = vmax.f32 %v3442_v17, %v3443_v62  ;;  %v4064_v17 = vpop.f32.mrf.mxu1  ;;  %v6005_v2 = vld [vmem:[#allocation28_spill] sm:$0xff]  ;;  %v6006_v62 = vld [vmem:[#allocation13_spill] sm:$0xff] }
 0x3cd   : > { %v3290_v56 = vmul.f32 %v3258_v43, %v5976_v3  ;;  %v3264_v58 = vadd.f32 %v5562_v57, %v3202_v12  ;;  %v3155_v38 = vrot.slane %v3133_v6, %v4619_v55  ;;  %v3417_v20 = vrot.slane %v3416_v59, 2 }
 0x3ce   : > { %v3424_v34 = vrot.slane %v3423_v9, 2  ;;  %v3431_v33 = vrot.slane %v3430_v5, 2  ;;  %v3294_v32 = vmul.f32 %v3262_v48, %v5220_v1  ;;  %v5651_v4 = vmax.f32 %v3456_v7, %v3457_v25  ;;  %v2911_v48 = vpop.f32.mrf.mxu1 }
 0x3cf   : > { %v3328_v40 = vadd.f32 %v5584_v42, %v3289_v19  ;;  %v3329_v30 = vadd.f32 %v5584_v42, %v3290_v56  ;;  %v3134_v18 = vcombine.high %v5644_v15, %v5644_v15  ;;  %v3438_v24 = vrot.slane %v3437_v29, 2 }
 0x3d0   : > { %v3263_v57 = vadd.f32 %v3202_v12, %v5576_v37  ;;  %v3163_v45 = vcombine.high %v5566_v8, %v5566_v8  ;;  %v3333_v41 = vadd.f32 %v5584_v42, %v3294_v32  ;;  %v3296_v26 = vmul.f32 %v3264_v58, %v6003_v50 }
 0x3d1   : > { %v3206_v31 = vrot.slane %v3155_v38, %v4566_v11  ;;  %v5667_v23 = vrot.slane %v5644_v15, %v4619_v55  ;;  %v5669_v22 = vmax.f32 %v3416_v59, %v3417_v20  ;;  %v5671_v21 = vmax.f32 %v3423_v9, %v3424_v34  ;;  %v6008_v34 = vld [vmem:[#allocation15_spill] sm:$0xff] }
 0x3d2   : > { %v5673_v60 = vmax.f32 %v3430_v5, %v3431_v33  ;;  %v3445_v37 = vrot.slane %v3444_v16, 2  ;;  %v3459_v13 = vrot.slane %v5651_v4, 2  ;;  %v3360_v8 = vmax.f32 %v3328_v40, 0.0  ;;  %v6009_v40 = vld [vmem:[#allocation16_spill] sm:$0xff] }
 0x3d3   : > { %v3361_v47 = vmax.f32 %v3329_v30, 0.0  ;;  %v3261_v36 = vadd.f32 %v3198_v54, %v5551_v52  ;;  %v5677_v28 = vmax.f32 %v3437_v29, %v3438_v24  ;;  %v3295_v53 = vmul.f32 %v3263_v57, %v6004_v35  ;;  %v6007_v54 = vld [vmem:[#allocation14_spill] sm:$0xff] }
 0x3d4   : > { %v3266_v14 = vadd.f32 %v5594_v10, %v3206_v31  ;;  %v3265_v61 = vadd.f32 %v3206_v31, %v5609_v27  ;;  %v3365_v7 = vmax.f32 %v3333_v41, 0.0  ;;  %v3335_v63 = vadd.f32 %v5584_v42, %v3296_v26 }
 0x3d5   : > { %v3293_v46 = vmul.f32 %v3261_v36, %v6005_v2  ;;  %v3210_v6 = vrot.slane %v3163_v45, %v4566_v11  ;;  %v3334_v59 = vadd.f32 %v5584_v42, %v3295_v53  ;;  %v3165_v9 = vcombine.high %v3155_v38, %v3155_v38  ;;  %v4067_v45 = vpop.f32.mrf.mxu1 }
 0x3d6   : > { %v3298_v52 = vmul.f32 %v3266_v14, %v6006_v62  ;;  %v3297_v12 = vmul.f32 %v3265_v61, %v6007_v54  ;;  %v3392_v5 = vmul.f32 %v3360_v8, %v5975_v0  ;;  %v3393_v10 = vmul.f32 %v3361_v47, %v5976_v3 }
 0x3d7   : > { %v3332_v27 = vadd.f32 %v5584_v42, %v3293_v46  ;;  %v3268_v43 = vadd.f32 %v5618_v39, %v3210_v6  ;;  %v3366_v25 = vmax.f32 %v3334_v59, 0.0  ;;  %v3267_v56 = vadd.f32 %v3210_v6, %v5629_v51 }
 0x3d8   : > { %v3337_v29 = vadd.f32 %v5584_v42, %v3298_v52  ;;  %v3336_v19 = vadd.f32 %v5584_v42, %v3297_v12  ;;  %v3367_v20 = vmax.f32 %v3335_v63, 0.0  ;;  %v3214_v0 = vrot.slane %v3165_v9, %v4566_v11  ;;  %v2921_v63 = vpop.f32.mrf.mxu1  ;;  %v6011_v52 = vld [vmem:[#allocation20_spill] sm:$0xff] }
 0x3d9   : > { %v3364_v58 = vmax.f32 %v3332_v27, 0.0  ;;  %v3300_v38 = vmul.f32 %v3268_v43, %v6008_v34  ;;  %v3397_v3 = vmul.f32 %v3365_v7, %v5220_v1  ;;  %v3299_v39 = vmul.f32 %v3267_v56, %v6009_v40 }
 0x3da   : > { %v3369_v33 = vmax.f32 %v3337_v29, 0.0  ;;  %v3368_v32 = vmax.f32 %v3336_v19, 0.0  ;;  %v5699_v30 = vmax.f32 %v3444_v16, %v3445_v37  ;;  %v3270_v51 = vadd.f32 %v5641_v49, %v3214_v0  ;;  %v6010_v37 = vld [vmem:[#allocation17_spill] sm:$0xff] }
 0x3db   : > { %v3396_v24 = vmul.f32 %v3364_v58, %v6005_v2  ;;  %v3339_v57 = vadd.f32 %v5584_v42, %v3300_v38  ;;  %v3419_v41 = vrot.slane %v5669_v22, 1  ;;  %v3398_v26 = vmul.f32 %v3366_v25, %v6004_v35  ;;  %v6012_v19 = vld [vmem:[#allocation29_spill] sm:$0xff]  ;;  %v6013_v58 = vld [vmem:[#allocation27_spill] sm:$0xff]  ;;  %v4070_v38 = vpop.f32.mrf.mxu1 }
 0x3dc   : > { %v3400_v31 = vmul.f32 %v3368_v32, %v6007_v54  ;;  %v3338_v1 = vadd.f32 %v5584_v42, %v3299_v39  ;;  %v3426_v8 = vrot.slane %v5671_v21, 1  ;;  %v3449_v47 = vmax.f32 %v3392_v5, %v3393_v10 }
 0x3dd   : > { %v3399_v16 = vmul.f32 %v3367_v20, %v6003_v50  ;;  %v3302_v36 = vmul.f32 %v3270_v51, %v6010_v37  ;;  %v3463_v53 = vmax.f32 %v3396_v24, %v3397_v3  ;;  %v3401_v14 = vmul.f32 %v3369_v33, %v6006_v62 }
 0x3de   : > { %v3370_v49 = vmax.f32 %v3338_v1, 0.0  ;;  %v3269_v61 = vadd.f32 %v3214_v0, %v5655_v44  ;;  %v3433_v7 = vrot.slane %v5673_v60, 1  ;;  %v3371_v35 = vmax.f32 %v3339_v57, 0.0 }
 0x3df   : > { %v3341_v2 = vadd.f32 %v5584_v42, %v3302_v36  ;;  %v3218_v46 = vrot.slane %v5667_v23, %v4566_v11  ;;  %v3440_v6 = vrot.slane %v5677_v28, 1  ;;  %v3470_v50 = vmax.f32 %v3398_v26, %v3399_v16 }
 0x3e0   : > { %v3477_v59 = vmax.f32 %v3400_v31, %v3401_v14  ;;  %v3301_v54 = vmul.f32 %v3269_v61, %v6011_v52  ;;  %v3447_v62 = vrot.slane %v5699_v30, 1  ;;  %v3402_v12 = vmul.f32 %v3370_v49, %v6009_v40  ;;  %v2931_v31 = vpop.f32.mrf.mxu1  ;;  %v6014_v61 = vld [vmem:[#allocation30_spill] sm:$0xff] }
 0x3e1   : > { %v3272_v44 = vadd.f32 %v4064_v17, %v3218_v46  ;;  %v3271_v9 = vadd.f32 %v3218_v46, %v2911_v48  ;;  %v3450_v5 = vrot.slane %v3449_v47, 4  ;;  %v3464_v10 = vrot.slane %v3463_v53, 4 }
 0x3e2   : > { %v3373_v27 = vmax.f32 %v3341_v2, 0.0  ;;  %v3340_v43 = vadd.f32 %v5584_v42, %v3301_v54  ;;  %v3420_v25 = vmax.f32 %v5669_v22, %v3419_v41  ;;  %v3403_v29 = vmul.f32 %v3371_v35, %v6008_v34  ;;  %v4073_v35 = vpop.f32.mrf.mxu1 }
 0x3e3   : > { %v3304_v56 = vmul.f32 %v3272_v44, %v6012_v19  ;;  %v3303_v20 = vmul.f32 %v3271_v9, %v6013_v58  ;;  %v3427_v0 = vmax.f32 %v5671_v21, %v3426_v8  ;;  %v3471_v3 = vrot.slane %v3470_v50, 4 }
 0x3e4   : > { %v3478_v33 = vrot.slane %v3477_v59, 4  ;;  %v3372_v17 = vmax.f32 %v3340_v43, 0.0  ;;  %v3484_v48 = vmax.f32 %v3402_v12, %v3403_v29  ;;  %v3162_v22 = vrot.slane %v3134_v18, %v4619_v55  ;;  %v2941_v43 = vpop.f32.mrf.mxu1 }
 0x3e5   : > { %v3343_v32 = vadd.f32 %v5584_v42, %v3304_v56  ;;  %v3342_v40 = vadd.f32 %v5584_v42, %v3303_v20  ;;  %v3451_v34 = vmax.f32 %v3449_v47, %v3450_v5  ;;  %v3465_v39 = vmax.f32 %v3463_v53, %v3464_v10 }
 0x3e6   : > { %v3405_v24 = vmul.f32 %v3373_v27, %v6010_v37  ;;  %v3404_v57 = vmul.f32 %v3372_v17, %v6011_v52  ;;  %v5736_v21 = vmax.f32 %v5673_v60, %v3433_v7  ;;  %v3222_v26 = vrot.slane %v3162_v22, %v4566_v11 }
 0x3e7   : > { %v3375_v51 = vmax.f32 %v3343_v32, 0.0  ;;  %v3374_v41 = vmax.f32 %v3342_v40, 0.0  ;;  %v5740_v1 = vmax.f32 %v5677_v28, %v3440_v6  ;;  %v3472_v8 = vmax.f32 %v3470_v50, %v3471_v3  ;;  %v6018_v32 = vld [vmem:[#allocation34_spill] sm:$0xff] }
 0x3e8   : > { %v3479_v15 = vmax.f32 %v3477_v59, %v3478_v33  ;;  %v3491_v55 = vmax.f32 %v3404_v57, %v3405_v24  ;;  %v3485_v18 = vrot.slane %v3484_v48, 4  ;;  %v3274_v37 = vadd.f32 %v4067_v45, %v3222_v26  ;;  %v6015_v59 = vld [vmem:[#allocation31_spill] sm:$0xff]  ;;  %v6017_v33 = vld [vmem:[#allocation33_spill] sm:$0xff] }
 0x3e9   : > { %v3407_v47 = vmul.f32 %v3375_v51, %v6012_v19  ;;  %v3406_v16 = vmul.f32 %v3374_v41, %v6013_v58  ;;  %v5745_v60 = vmax.f32 %v5699_v30, %v3447_v62  ;;  %v3452_v36 = vrot.slane %v3451_v34, 2 }
 0x3ea   : > { %v3466_v53 = vrot.slane %v3465_v39, 2  ;;  %v3273_v14 = vadd.f32 %v3222_v26, %v2921_v63  ;;  %v3306_v7 = vmul.f32 %v3274_v37, %v6014_v61  ;;  %v3164_v28 = vcombine.high %v5667_v23, %v5667_v23  ;;  %v6019_v26 = vld [vmem:[#allocation35_spill] sm:$0xff] }
 0x3eb   : > { %v3498_v49 = vmax.f32 %v3406_v16, %v3407_v47  ;;  %v3166_v2 = vcombine.high %v3162_v22, %v3162_v22  ;;  %v3542_v46 = vsel %vm1192_vm4, %v3427_v0, %v3420_v25  ;;  %v3473_v6 = vrot.slane %v3472_v8, 2  ;;  %v6016_v0 = vld [vmem:[#allocation32_spill] sm:$0xff] }
 0x3ec   : > { %v3492_v50 = vrot.slane %v3491_v55, 4  ;;  %v3305_v45 = vmul.f32 %v3273_v14, %v6015_v59  ;;  %v3480_v52 = vrot.slane %v3479_v15, 2  ;;  %v3486_v30 = vmax.f32 %v3484_v48, %v3485_v18 }
 0x3ed   : > { %v3345_v54 = vadd.f32 %v5584_v42, %v3306_v7  ;;  %v3226_v63 = vrot.slane %v3164_v28, %v4566_v11  ;;  %v3453_v62 = vmax.f32 %v3451_v34, %v3452_v36  ;;  %v3467_v12 = vmax.f32 %v3465_v39, %v3466_v53 }
 0x3ee   : > { %v3344_v44 = vadd.f32 %v5584_v42, %v3305_v45  ;;  %v3230_v23 = vrot.slane %v3166_v2, %v4566_v11  ;;  %v3499_v9 = vrot.slane %v3498_v49, 4  ;;  %v5756_v25 = vmax.f32 %v3472_v8, %v3473_v6 }
 0x3ef   : > { %v3377_v5 = vmax.f32 %v3345_v54, 0.0  ;;  %v3276_v10 = vadd.f32 %v4070_v38, %v3226_v63  ;;  %v3275_v27 = vadd.f32 %v3226_v63, %v2931_v31  ;;  %v3493_v29 = vmax.f32 %v3491_v55, %v3492_v50 }
 0x3f0   : > { %v3376_v19 = vmax.f32 %v3344_v44, 0.0  ;;  %v3278_v56 = vadd.f32 %v4073_v35, %v3230_v23  ;;  %v3481_v58 = vmax.f32 %v3479_v15, %v3480_v52  ;;  %v3487_v20 = vrot.slane %v3486_v30, 2 }
 0x3f1   : > { %v3308_v3 = vmul.f32 %v3276_v10, %v6016_v0  ;;  %v3307_v17 = vmul.f32 %v3275_v27, %v6017_v33  ;;  %v3409_v48 = vmul.f32 %v3377_v5, %v6014_v61  ;;  %v3277_v40 = vadd.f32 %v3230_v23, %v2941_v43 }
 0x3f2   : > { %v3408_v11 = vmul.f32 %v3376_v19, %v6015_v59  ;;  %v3310_v38 = vmul.f32 %v3278_v56, %v6018_v32  ;;  %v3468_v22 = vrot.slane %v3467_v12, 1  ;;  %v3500_v34 = vmax.f32 %v3498_v49, %v3499_v9 }
 0x3f3   : > { %v3347_v39 = vadd.f32 %v5584_v42, %v3308_v3  ;;  %v3346_v24 = vadd.f32 %v5584_v42, %v3307_v17  ;;  %v3494_v57 = vrot.slane %v3493_v29, 2  ;;  %v3309_v31 = vmul.f32 %v3277_v40, %v6019_v26 }
 0x3f4   : > { %v3505_v51 = vmax.f32 %v3408_v11, %v3409_v48  ;;  %v3349_v41 = vadd.f32 %v5584_v42, %v3310_v38  ;;  %v3454_v55 = vrot.slane %v3453_v62, 1  ;;  %v3460_v18 = vmax.f32 %v5651_v4, %v3459_v13 }
 0x3f5   : > { %v3379_v8 = vmax.f32 %v3347_v39, 0.0  ;;  %v3378_v15 = vmax.f32 %v3346_v24, 0.0  ;;  %v3488_v47 = vmax.f32 %v3486_v30, %v3487_v20  ;;  %v3348_v36 = vadd.f32 %v5584_v42, %v3309_v31 }
 0x3f6   : > { %v3506_v16 = vrot.slane %v3505_v51, 4  ;;  %v3381_v37 = vmax.f32 %v3349_v41, 0.0  ;;  %v3501_v53 = vrot.slane %v3500_v34, 2  ;;  %v3461_v61 = vrot.slane %v3460_v18, 1 }
 0x3f7   : > { %v3411_v14 = vmul.f32 %v3379_v8, %v6016_v0  ;;  %v3410_v49 = vmul.f32 %v3378_v15, %v6017_v33  ;;  %v3495_v7 = vmax.f32 %v3493_v29, %v3494_v57  ;;  %v3380_v35 = vmax.f32 %v3348_v36, 0.0 }
 0x3f8   : > { %v3507_v28 = vmax.f32 %v3505_v51, %v3506_v16  ;;  %v3543_v2 = vsel %vm1195_vm5, %v5736_v21, %v3542_v46  ;;  %v3413_v13 = vmul.f32 %v3381_v37, %v6018_v32  ;;  %v3455_v6 = vmax.f32 %v3453_v62, %v3454_v55 }
 0x3f9   : > { %v3512_v4 = vmax.f32 %v3410_v49, %v3411_v14  ;;  %v3544_v42 = vsel %vm1198_vm6, %v5740_v1, %v3543_v2  ;;  %v3412_v59 = vmul.f32 %v3380_v35, %v6019_v26  ;;  %v3462_v45 = vmax.f32 %v3460_v18, %v3461_v61 }
 0x3fa   : > { %v3508_v50 = vrot.slane %v3507_v28, 2  ;;  %v3545_v52 = vsel %vm1201_vm7, %v5745_v60, %v3544_v42  ;;  %v3469_v30 = vmax.f32 %v3467_v12, %v3468_v22  ;;  %v3502_v54 = vmax.f32 %v3500_v34, %v3501_v53 }
 0x3fb   : > { %v3513_v63 = vrot.slane %v3512_v4, 4  ;;  %v3546_v44 = vsel %vm1204_vm8, %v3455_v6, %v3545_v52  ;;  %v3482_v21 = vrot.slane %v3481_v58, 1  ;;  %v3519_v23 = vmax.f32 %v3412_v59, %v3413_v13 }
 0x3fc   : > { %v3509_v46 = vmax.f32 %v3507_v28, %v3508_v50  ;;  %v3547_v62 = vsel %vm1207_vm9, %v3462_v45, %v3546_v44  ;;  %v3489_v9 = vrot.slane %v3488_v47, 1  ;;  %v3475_v10 = vrot.slane %v5756_v25, 1 }
 0x3fd   : > { %v3514_v5 = vmax.f32 %v3512_v4, %v3513_v63  ;;  %v3548_v1 = vsel %vm1210_vm10, %v3469_v30, %v3547_v62  ;;  %v3496_v27 = vrot.slane %v3495_v7, 1  ;;  %v3520_v43 = vrot.slane %v3519_v23, 4 }
 0x3fe   : > { %3558 = vst [vmem:[%s398_s16] sm:$0xff] %v3548_v1  ;;  %v3503_v60 = vrot.slane %v3502_v54, 1  ;;  %v3483_v29 = vmax.f32 %v3481_v58, %v3482_v21  ;;  %v3510_v19 = vrot.slane %v3509_v46, 1  ;;  %v3490_v20 = vmax.f32 %v3488_v47, %v3489_v9 }
 0x3ff   : > { %v3515_v12 = vrot.slane %v3514_v5, 2  ;;  %v3521_v56 = vmax.f32 %v3519_v23, %v3520_v43  ;;  %v3476_v3 = vmax.f32 %v5756_v25, %v3475_v10  ;;  %v3497_v33 = vmax.f32 %v3495_v7, %v3496_v27 }
 0x400   : > { %v3504_v48 = vmax.f32 %v3502_v54, %v3503_v60  ;;  %v3511_v38 = vmax.f32 %v3509_v46, %v3510_v19 }
 0x401   : > { %v3516_v0 = vmax.f32 %v3514_v5, %v3515_v12  ;;  %v3522_v17 = vrot.slane %v3521_v56, 2  ;;  %v3549_v32 = vsel %vm1192_vm4, %v3483_v29, %v3476_v3 }
 0x402   : > { %v3550_v22 = vsel %vm1195_vm5, %v3490_v20, %v3549_v32 }
 0x403   : > { %v3517_v11 = vrot.slane %v3516_v0, 1  ;;  %v3523_v40 = vmax.f32 %v3521_v56, %v3522_v17  ;;  %v3551_v58 = vsel %vm1198_vm6, %v3497_v33, %v3550_v22 }
 0x404   : > { %v3552_v25 = vsel %vm1201_vm7, %v3504_v48, %v3551_v58 }
 0x405   : > { %v3518_v34 = vmax.f32 %v3516_v0, %v3517_v11  ;;  %v3524_v39 = vrot.slane %v3523_v40, 1  ;;  %v3553_v57 = vsel %vm1204_vm8, %v3511_v38, %v3552_v25 }
 0x407   : > { %v3525_v24 = vmax.f32 %v3523_v40, %v3524_v39  ;;  %v3554_v51 = vsel %vm1207_vm9, %v3518_v34, %v3553_v57 }
 0x409   : > { %v3555_v41 = vsel %vm1210_vm10, %v3525_v24, %v3554_v51 }
 0x40a   : > { %3559 = vst [vmem:[%s398_s16 + $0x8] sm:$0xff] %v3555_v41 }
 0x40b   : > { %4160 = shalt.err (!%p4157_p4)
}
 0x40c   : > { %s4161_s14 = scalar_lea.hbm %s5798_s12, 256  ;;  %s4165_s30 = scalar_lea.hbm %s5857_s11, 512 }
 0x40d   : > { %p4162_p7 = scmp.ne.s32.totalorder %s5798_s12, %s4161_s14  ;;  %p4166_p10 = scmp.lt.s32.totalorder %s5798_s12, %s5857_s11 }
 0x40e   : > { %p4167_p11 = scmp.lt.s32.totalorder %s4165_s30, %s4161_s14 }
 0x40f   : > { %p4163_p8 = pnand %p4162_p7, %p4313_p5 }
 0x410   : > { %p4168_p12 = por %p4167_p11, %p4166_p10 }
 0x411   : > { %p4164_p9 = pneg %p4163_p8 }
 0x413   : > { %p4169_p13 = pnand %p4168_p12, %p4164_p9 }
 0x415   : > { %4172 = shalt.err (!%p4169_p13)
}
 0x416   : > { %s4213_s29 = smov 128   ;;  %s4214_s15 = smov 8  }
 0x417   : > { %4097 = dma.vmem_to_hbm [thread:$0]  (%p4313_p5), %s5800_s24, 256, %s5798_s12, %s5806_s21, %s4213_s29, %s4213_s29, %s4214_s15  }
 0x418 PF: > { %p4103_p0 = scmp.ge.s32.totalorder %s4207_s20, 2  ;;  %s3589_s22 = sand.u32 1, %s4195_s17  }
 0x419   : > { %s3590_s0 = scalar_lea.sflag [#allocation3], %s3589_s22 }
 0x41a   : > { %p4100_p1 = pnand %p4103_p0, %p4317_p6 }
 0x41c   : > { %p4101_p2 = pneg %p4100_p1 }
 0x41e   : > { %4190 = dma.done.wait (%p4101_p2), %s3590_s0, 256  }
 0x41f   : > { %4192 = vsyncadd (%p4101_p2), %s3590_s0, 4294967040  ;;  %p21_p3 = scmp.ge.s32.totalorder %s4300_s23, 4   ;;  %s6020_s17 = smov %s4199_s18 }
 0x420   : > { %s6021_s18 = smov %s4203_s19  ;;  %s6022_s19 = smov %s4311_s26 }
 0x421   : > { %s6023_s20 = smov %s4300_s23  ;;  %23 = sbr.rel (!%p21_p3) target bundleno = 5 (0x5), region = 102 }
 0x426   :  { %3595 = vsyncpa [#allocation3], 1 }
 0x427   :  { %3597 = vsyncpa [#allocation3 + $0x1], 1 }

</bundles_post_ra>
